<compile_context>
chip_gen: v7x
topology: tpu7x:2x2x1
jax: 0.10.0
libtpu: 0.0.40
codegen_flags: <defaults>
</compile_context>

<pallas_src>
import numpy as np
import jax
import jax.numpy as jnp
from jax import lax
from jax.experimental import pallas as pl
from jax.experimental.pallas import tpu as pltpu

EPS = 1e-5


# ------------------------------ Pallas forward ------------------------------
def spatial_attention_forward(x, y, params, *, batch_block=1):
    N, C, H, W = x.shape
    HW = H * W
    C_out = params["w3"].shape[0]
    taps = [(dy, dx) for dy in (-1, 0, 1) for dx in (-1, 0, 1)]   # ky-major, matches OIHW
    col_rows = 9 * max(4, C)                                      # im2col scratch rows

    # Batch items per grid step (amortizes per-step overhead on single-TC v5e/v6e;
    # keep 1 on v7x so both TensorCores get work via the "parallel" batch axis).
    NB = batch_block if (batch_block >= 1 and N % batch_block == 0) else 1

    # ---- fold BatchNorm (inference / running stats) into conv weight & bias (host glue) ----
    def fold(w, g, b, m, v):
        s = g / jnp.sqrt(v + EPS)                                  # (O,)
        wf = w * s[:, None, None, None]                            # (O, Ci, 3, 3)
        o, ci = w.shape[0], w.shape[1]
        # tap-major, channel-minor rows: row = (ky*3+kx)*Ci + c  -> matches im2col layout
        wm = jnp.transpose(wf, (0, 2, 3, 1)).reshape(o, 9 * ci).astype(jnp.bfloat16)
        bm = (b - m * s).reshape(o, 1).astype(jnp.float32)
        return wm, bm

    wm1, bm1 = fold(params["w1"], params["g1"], params["b1"], params["m1"], params["v1"])
    wm2, bm2 = fold(params["w2"], params["g2"], params["b2"], params["m2"], params["v2"])
    wm3, bm3 = fold(params["w3"], params["g3"], params["b3"], params["m3"], params["v3"])

    # ---- precompute the 9 zero-padding validity masks ONCE (host glue, constant input) ----
    pos = jnp.arange(HW, dtype=jnp.int32)
    h_pos, w_pos = pos // W, pos % W
    mask = jnp.stack(
        [((h_pos + dy >= 0) & (h_pos + dy < H) &
          (w_pos + dx >= 0) & (w_pos + dx < W)) for dy, dx in taps],
        axis=0).astype(jnp.float32)                                # (9, HW), {0,1}

    # NCHW -> (N, C, HW): pure reshape, HW (=256) becomes the lane dimension.
    # bf16 ingest halves input DMA bytes; elementwise math is upcast to f32 in-kernel.
    x3 = x.reshape(N, C, HW).astype(jnp.bfloat16)
    y3 = y.reshape(N, C, HW).astype(jnp.bfloat16)

    def kernel(mask_ref, x_ref, y_ref, w1_ref, b1_ref, w2_ref, b2_ref, w3_ref, b3_ref,
               o_ref, col_ref):

        def conv3x3(src, w_ref, b_ref):
            # src: (c_in, HW) f32 -> (c_out, HW) f32; ONE MXU matmul with K = 9*c_in.
            c_in = src.shape[0]
            for k, (dy, dx) in enumerate(taps):
                off = dy * W + dx                                  # flattened tap offset
                shifted = src if off == 0 else pltpu.roll(src, (-off) % HW, axis=1)
                # fused: zero-padding mask multiply + bf16 cast + store into bf16 im2col buf
                col_ref[k * c_in:(k + 1) * c_in, :] = (
                    shifted * mask_ref[k:k + 1, :]).astype(jnp.bfloat16)
            cols = col_ref[0:9 * c_in, :]                          # (9*c_in, HW) bf16
            acc = jnp.dot(w_ref[...], cols, preferred_element_type=jnp.float32)
            return acc + b_ref[...]                                # bias broadcast over lanes

        for b in range(NB):                                        # unrolled batch-block loop
            xb = x_ref[b].astype(jnp.float32)                      # (C, HW)
            yb = y_ref[b].astype(jnp.float32)

            # channel statistics -> feats (4, HW): [mean_x, max_x, mean_y, max_y]
            feats = jnp.concatenate(
                [jnp.mean(xb, axis=0, keepdims=True),
                 jnp.max(xb, axis=0, keepdims=True),
                 jnp.mean(yb, axis=0, keepdims=True),
                 jnp.max(yb, axis=0, keepdims=True)], axis=0)

            # fuse: conv3x3(4->2)+BN+ReLU, conv3x3(2->1)+BN+Sigmoid
            h1 = jnp.maximum(conv3x3(feats, w1_ref, b1_ref), 0.0)   # (2, HW)
            logit = conv3x3(h1, w2_ref, b2_ref)                      # (1, HW)
            atten = 1.0 / (1.0 + jnp.exp(-logit))                    # sigmoid (EUP)

            # spatial-attention blend: x*a + y*(1-a)
            fused = yb + (xb - yb) * atten                           # (C, HW)

            # conv_out: conv3x3(C->C_out)+BN+ReLU
            o_ref[b] = jnp.maximum(conv3x3(fused, w3_ref, b3_ref), 0.0)

    out3 = pl.pallas_call(
        kernel,
        out_shape=jax.ShapeDtypeStruct((N, C_out, HW), jnp.float32),
        grid_spec=pltpu.PrefetchScalarGridSpec(
            num_scalar_prefetch=0,
            grid=(N // NB,),
            in_specs=[
                pl.BlockSpec((9, HW), lambda n: (0, 0)),           # constant tap masks
                pl.BlockSpec((NB, C, HW), lambda n: (n, 0, 0)),
                pl.BlockSpec((NB, C, HW), lambda n: (n, 0, 0)),
                pl.BlockSpec(wm1.shape, lambda n: (0, 0)),
                pl.BlockSpec(bm1.shape, lambda n: (0, 0)),
                pl.BlockSpec(wm2.shape, lambda n: (0, 0)),
                pl.BlockSpec(bm2.shape, lambda n: (0, 0)),
                pl.BlockSpec(wm3.shape, lambda n: (0, 0)),
                pl.BlockSpec(bm3.shape, lambda n: (0, 0)),
            ],
            out_specs=pl.BlockSpec((NB, C_out, HW), lambda n: (n, 0, 0)),
            scratch_shapes=[
                pltpu.VMEM((col_rows, HW), jnp.bfloat16),   # bf16 im2col buffer (all 3 convs)
            ],
        ),
        compiler_params=pltpu.CompilerParams(dimension_semantics=("parallel",)),
    )(mask, x3, y3, wm1, bm1, wm2, bm2, wm3, bm3)

    return out3.reshape(N, C_out, H, W)                   # (N, C_out, HW) -> NCHW, no transpose


# ------------------------------ pure-JAX reference ------------------------------
def reference(x, y, params):
    def bn(z, g, b, m, v):
        inv = 1.0 / jnp.sqrt(v + EPS)
        return (z - m[None, :, None, None]) * (g * inv)[None, :, None, None] \
            + b[None, :, None, None]

    def conv(z, w):
        return lax.conv_general_dilated(z, w, (1, 1), ((1, 1), (1, 1)),
                                        dimension_numbers=('NCHW', 'OIHW', 'NCHW'),
                                        precision=lax.Precision.HIGHEST)

    mean_x = jnp.mean(x, axis=1, keepdims=True)
    max_x = jnp.max(x, axis=1, keepdims=True)
    mean_y = jnp.mean(y, axis=1, keepdims=True)
    max_y = jnp.max(y, axis=1, keepdims=True)
    feats = jnp.concatenate([mean_x, max_x, mean_y, max_y], axis=1)

    a = jnp.maximum(bn(conv(feats, params["w1"]),
                       params["g1"], params["b1"], params["m1"], params["v1"]), 0.0)
    a = bn(conv(a, params["w2"]), params["g2"], params["b2"], params["m2"], params["v2"])
    atten = 1.0 / (1.0 + jnp.exp(-a))
    blended = x * atten + y * (1.0 - atten)
    z = bn(conv(blended, params["w3"]), params["g3"], params["b3"], params["m3"], params["v3"])
    return jnp.maximum(z, 0.0)


if __name__ == "__main__":
    N, C_IN, C_OUT, H, W = 2, 8, 16, 16, 16
    ks = jax.random.split(jax.random.PRNGKey(0), 17)
    nrm, uni = jax.random.normal, jax.random.uniform

    x = nrm(ks[0], (N, C_IN, H, W), jnp.float32)
    y = nrm(ks[1], (N, C_IN, H, W), jnp.float32)
    params = dict(
        # fuse[0]: Conv2d(4, 2, 3, 1, 1, bias=False) + BatchNorm2d(2)
        w1=0.1 * nrm(ks[2], (2, 4, 3, 3), jnp.float32),
        g1=0.5 + uni(ks[3], (2,), jnp.float32),
        b1=0.1 * nrm(ks[4], (2,), jnp.float32),
        m1=0.1 * nrm(ks[5], (2,), jnp.float32),
        v1=0.5 + uni(ks[6], (2,), jnp.float32),
        # fuse[3]: Conv2d(2, 1, 3, 1, 1, bias=False) + BatchNorm2d(1) (+ Sigmoid)
        w2=0.1 * nrm(ks[7], (1, 2, 3, 3), jnp.float32),
        g2=0.5 + uni(ks[8], (1,), jnp.float32),
        b2=0.1 * nrm(ks[9], (1,), jnp.float32),
        m2=0.1 * nrm(ks[10], (1,), jnp.float32),
        v2=0.5 + uni(ks[11], (1,), jnp.float32),
        # conv_out: Conv2d(C_IN, C_OUT, 3, 1, 1, bias=False) + BatchNorm2d(C_OUT) + ReLU
        w3=0.1 * nrm(ks[12], (C_OUT, C_IN, 3, 3), jnp.float32),
        g3=0.5 + uni(ks[13], (C_OUT,), jnp.float32),
        b3=0.1 * nrm(ks[14], (C_OUT,), jnp.float32),
        m3=0.1 * nrm(ks[15], (C_OUT,), jnp.float32),
        v3=0.5 + uni(ks[16], (C_OUT,), jnp.float32),
    )

    out = jax.block_until_ready(spatial_attention_forward(x, y, params))
    ref = jax.block_until_ready(reference(x, y, params))

    assert out.shape == (N, C_OUT, H, W), out.shape
    np.testing.assert_allclose(np.asarray(out), np.asarray(ref), rtol=2e-2, atol=2e-2)
    print("KERNEL_OK")
</pallas_src>

<mosaic_0001>
module attributes {stable_mosaic.version = 11 : i64} {
  func.func @kernel(%arg0: i32, %arg1: memref<9x256xf32, #tpu.memory_space<vmem>>, %arg2: memref<1x8x256xbf16, #tpu.memory_space<vmem>>, %arg3: memref<1x8x256xbf16, #tpu.memory_space<vmem>>, %arg4: memref<2x36xbf16, #tpu.memory_space<vmem>>, %arg5: memref<2x1xf32, #tpu.memory_space<vmem>>, %arg6: memref<1x18xbf16, #tpu.memory_space<vmem>>, %arg7: memref<1x1xf32, #tpu.memory_space<vmem>>, %arg8: memref<16x72xbf16, #tpu.memory_space<vmem>>, %arg9: memref<16x1xf32, #tpu.memory_space<vmem>>, %arg10: memref<1x16x256xf32, #tpu.memory_space<vmem>>, %arg11: memref<72x256xbf16, #tpu.memory_space<vmem>>) attributes {dimension_semantics = [#tpu.dimension_semantics<parallel>], iteration_bounds = array<i64: 2>, scalar_prefetch = 0 : i64, scratch_operands = 1 : i64, tpu.core_type = #tpu.core_type<tc>, window_params = [{pipeline_mode = #tpu.pipeline_mode<synchronous>, transform_indices = @transform_0, window_bounds = array<i64: 9, 256>}, {transform_indices = @transform_1, window_bounds = array<i64: 1, 8, 256>}, {transform_indices = @transform_2, window_bounds = array<i64: 1, 8, 256>}, {pipeline_mode = #tpu.pipeline_mode<synchronous>, transform_indices = @transform_3, window_bounds = array<i64: 2, 36>}, {pipeline_mode = #tpu.pipeline_mode<synchronous>, transform_indices = @transform_4, window_bounds = array<i64: 2, 1>}, {pipeline_mode = #tpu.pipeline_mode<synchronous>, transform_indices = @transform_5, window_bounds = array<i64: 1, 18>}, {pipeline_mode = #tpu.pipeline_mode<synchronous>, transform_indices = @transform_6, window_bounds = array<i64: 1, 1>}, {pipeline_mode = #tpu.pipeline_mode<synchronous>, transform_indices = @transform_7, window_bounds = array<i64: 16, 72>}, {pipeline_mode = #tpu.pipeline_mode<synchronous>, transform_indices = @transform_8, window_bounds = array<i64: 16, 1>}, {transform_indices = @transform_9, window_bounds = array<i64: 1, 16, 256>}]} {
    %c0 = arith.constant 0 : index
    %c0_0 = arith.constant 0 : index
    %c0_1 = arith.constant 0 : index
    %0 = vector.load %arg2[%c0, %c0_0, %c0_1] : memref<1x8x256xbf16, #tpu.memory_space<vmem>>, vector<1x8x256xbf16>
    %1 = vector.shape_cast %0 : vector<1x8x256xbf16> to vector<8x256xbf16>
    %2 = arith.extf %1 : vector<8x256xbf16> to vector<8x256xf32>
    %c0_2 = arith.constant 0 : index
    %c0_3 = arith.constant 0 : index
    %c0_4 = arith.constant 0 : index
    %3 = vector.load %arg3[%c0_2, %c0_3, %c0_4] : memref<1x8x256xbf16, #tpu.memory_space<vmem>>, vector<1x8x256xbf16>
    %4 = vector.shape_cast %3 : vector<1x8x256xbf16> to vector<8x256xbf16>
    %5 = arith.extf %4 : vector<8x256xbf16> to vector<8x256xf32>
    %cst = arith.constant dense<0.000000e+00> : vector<256xf32>
    %6 = vector.multi_reduction <add>, %2, %cst [0] : vector<8x256xf32> to vector<256xf32>
    %7 = vector.shape_cast %6 : vector<256xf32> to vector<1x256xf32>
    %cst_5 = arith.constant 8.000000e+00 : f32
    %8 = vector.broadcast %cst_5 : f32 to vector<1x256xf32>
    %9 = arith.divf %7, %8 : vector<1x256xf32>
    %cst_6 = arith.constant dense<0xFF800000> : vector<256xf32>
    %10 = vector.multi_reduction <maximumf>, %2, %cst_6 [0] : vector<8x256xf32> to vector<256xf32>
    %11 = vector.shape_cast %10 : vector<256xf32> to vector<1x256xf32>
    %cst_7 = arith.constant dense<0.000000e+00> : vector<256xf32>
    %12 = vector.multi_reduction <add>, %5, %cst_7 [0] : vector<8x256xf32> to vector<256xf32>
    %13 = vector.shape_cast %12 : vector<256xf32> to vector<1x256xf32>
    %cst_8 = arith.constant 8.000000e+00 : f32
    %14 = vector.broadcast %cst_8 : f32 to vector<1x256xf32>
    %15 = arith.divf %13, %14 : vector<1x256xf32>
    %cst_9 = arith.constant dense<0xFF800000> : vector<256xf32>
    %16 = vector.multi_reduction <maximumf>, %5, %cst_9 [0] : vector<8x256xf32> to vector<256xf32>
    %17 = vector.shape_cast %16 : vector<256xf32> to vector<1x256xf32>
    %18 = tpu.concatenate %9, %11, %15, %17 in 0 : vector<1x256xf32>, vector<1x256xf32>, vector<1x256xf32>, vector<1x256xf32> -> vector<4x256xf32>
    %c17_i32 = arith.constant 17 : i32
    %19 = tpu.dynamic_rotate %18 by %c17_i32 dim 1 : vector<4x256xf32>, i32 -> vector<4x256xf32>
    %c0_10 = arith.constant 0 : index
    %c0_11 = arith.constant 0 : index
    %20 = vector.load %arg1[%c0_10, %c0_11] : memref<9x256xf32, #tpu.memory_space<vmem>>, vector<1x256xf32>
    %21 = vector.broadcast %20 : vector<1x256xf32> to vector<4x256xf32>
    %22 = arith.mulf %19, %21 : vector<4x256xf32>
    %23 = arith.truncf %22 : vector<4x256xf32> to vector<4x256xbf16>
    %c0_12 = arith.constant 0 : index
    %c0_13 = arith.constant 0 : index
    %24 = vector.load %arg11[%c0_12, %c0_13] : memref<72x256xbf16, #tpu.memory_space<vmem>>, vector<4x256xbf16>
    tpu.vector_store %arg11[%c0_12, %c0_13], %23 {strides = array<i32>} : memref<72x256xbf16, #tpu.memory_space<vmem>>, vector<4x256xbf16>,
    %c16_i32 = arith.constant 16 : i32
    %25 = tpu.dynamic_rotate %18 by %c16_i32 dim 1 : vector<4x256xf32>, i32 -> vector<4x256xf32>
    %c1 = arith.constant 1 : index
    %c0_14 = arith.constant 0 : index
    %26 = vector.load %arg1[%c1, %c0_14] : memref<9x256xf32, #tpu.memory_space<vmem>>, vector<1x256xf32>
    %27 = vector.broadcast %26 : vector<1x256xf32> to vector<4x256xf32>
    %28 = arith.mulf %25, %27 : vector<4x256xf32>
    %29 = arith.truncf %28 : vector<4x256xf32> to vector<4x256xbf16>
    %c4 = arith.constant 4 : index
    %c0_15 = arith.constant 0 : index
    %30 = vector.load %arg11[%c4, %c0_15] : memref<72x256xbf16, #tpu.memory_space<vmem>>, vector<4x256xbf16>
    tpu.vector_store %arg11[%c4, %c0_15], %29 {strides = array<i32>} : memref<72x256xbf16, #tpu.memory_space<vmem>>, vector<4x256xbf16>,
    %c15_i32 = arith.constant 15 : i32
    %31 = tpu.dynamic_rotate %18 by %c15_i32 dim 1 : vector<4x256xf32>, i32 -> vector<4x256xf32>
    %c2 = arith.constant 2 : index
    %c0_16 = arith.constant 0 : index
    %32 = vector.load %arg1[%c2, %c0_16] : memref<9x256xf32, #tpu.memory_space<vmem>>, vector<1x256xf32>
    %33 = vector.broadcast %32 : vector<1x256xf32> to vector<4x256xf32>
    %34 = arith.mulf %31, %33 : vector<4x256xf32>
    %35 = arith.truncf %34 : vector<4x256xf32> to vector<4x256xbf16>
    %c8 = arith.constant 8 : index
    %c0_17 = arith.constant 0 : index
    %36 = vector.load %arg11[%c8, %c0_17] : memref<72x256xbf16, #tpu.memory_space<vmem>>, vector<4x256xbf16>
    tpu.vector_store %arg11[%c8, %c0_17], %35 {strides = array<i32>} : memref<72x256xbf16, #tpu.memory_space<vmem>>, vector<4x256xbf16>,
    %c1_i32 = arith.constant 1 : i32
    %37 = tpu.dynamic_rotate %18 by %c1_i32 dim 1 : vector<4x256xf32>, i32 -> vector<4x256xf32>
    %c3 = arith.constant 3 : index
    %c0_18 = arith.constant 0 : index
    %38 = vector.load %arg1[%c3, %c0_18] : memref<9x256xf32, #tpu.memory_space<vmem>>, vector<1x256xf32>
    %39 = vector.broadcast %38 : vector<1x256xf32> to vector<4x256xf32>
    %40 = arith.mulf %37, %39 : vector<4x256xf32>
    %41 = arith.truncf %40 : vector<4x256xf32> to vector<4x256xbf16>
    %c12 = arith.constant 12 : index
    %c0_19 = arith.constant 0 : index
    %42 = vector.load %arg11[%c12, %c0_19] : memref<72x256xbf16, #tpu.memory_space<vmem>>, vector<4x256xbf16>
    tpu.vector_store %arg11[%c12, %c0_19], %41 {strides = array<i32>} : memref<72x256xbf16, #tpu.memory_space<vmem>>, vector<4x256xbf16>,
    %c4_20 = arith.constant 4 : index
    %c0_21 = arith.constant 0 : index
    %43 = vector.load %arg1[%c4_20, %c0_21] : memref<9x256xf32, #tpu.memory_space<vmem>>, vector<1x256xf32>
    %44 = vector.broadcast %43 : vector<1x256xf32> to vector<4x256xf32>
    %45 = arith.mulf %18, %44 : vector<4x256xf32>
    %46 = arith.truncf %45 : vector<4x256xf32> to vector<4x256xbf16>
    %c16 = arith.constant 16 : index
    %c0_22 = arith.constant 0 : index
    %47 = vector.load %arg11[%c16, %c0_22] : memref<72x256xbf16, #tpu.memory_space<vmem>>, vector<4x256xbf16>
    tpu.vector_store %arg11[%c16, %c0_22], %46 {strides = array<i32>} : memref<72x256xbf16, #tpu.memory_space<vmem>>, vector<4x256xbf16>,
    %c255_i32 = arith.constant 255 : i32
    %48 = tpu.dynamic_rotate %18 by %c255_i32 dim 1 : vector<4x256xf32>, i32 -> vector<4x256xf32>
    %c5 = arith.constant 5 : index
    %c0_23 = arith.constant 0 : index
    %49 = vector.load %arg1[%c5, %c0_23] : memref<9x256xf32, #tpu.memory_space<vmem>>, vector<1x256xf32>
    %50 = vector.broadcast %49 : vector<1x256xf32> to vector<4x256xf32>
    %51 = arith.mulf %48, %50 : vector<4x256xf32>
    %52 = arith.truncf %51 : vector<4x256xf32> to vector<4x256xbf16>
    %c20 = arith.constant 20 : index
    %c0_24 = arith.constant 0 : index
    %53 = vector.load %arg11[%c20, %c0_24] : memref<72x256xbf16, #tpu.memory_space<vmem>>, vector<4x256xbf16>
    tpu.vector_store %arg11[%c20, %c0_24], %52 {strides = array<i32>} : memref<72x256xbf16, #tpu.memory_space<vmem>>, vector<4x256xbf16>,
    %c241_i32 = arith.constant 241 : i32
    %54 = tpu.dynamic_rotate %18 by %c241_i32 dim 1 : vector<4x256xf32>, i32 -> vector<4x256xf32>
    %c6 = arith.constant 6 : index
    %c0_25 = arith.constant 0 : index
    %55 = vector.load %arg1[%c6, %c0_25] : memref<9x256xf32, #tpu.memory_space<vmem>>, vector<1x256xf32>
    %56 = vector.broadcast %55 : vector<1x256xf32> to vector<4x256xf32>
    %57 = arith.mulf %54, %56 : vector<4x256xf32>
    %58 = arith.truncf %57 : vector<4x256xf32> to vector<4x256xbf16>
    %c24 = arith.constant 24 : index
    %c0_26 = arith.constant 0 : index
    %59 = vector.load %arg11[%c24, %c0_26] : memref<72x256xbf16, #tpu.memory_space<vmem>>, vector<4x256xbf16>
    tpu.vector_store %arg11[%c24, %c0_26], %58 {strides = array<i32>} : memref<72x256xbf16, #tpu.memory_space<vmem>>, vector<4x256xbf16>,
    %c240_i32 = arith.constant 240 : i32
    %60 = tpu.dynamic_rotate %18 by %c240_i32 dim 1 : vector<4x256xf32>, i32 -> vector<4x256xf32>
    %c7 = arith.constant 7 : index
    %c0_27 = arith.constant 0 : index
    %61 = vector.load %arg1[%c7, %c0_27] : memref<9x256xf32, #tpu.memory_space<vmem>>, vector<1x256xf32>
    %62 = vector.broadcast %61 : vector<1x256xf32> to vector<4x256xf32>
    %63 = arith.mulf %60, %62 : vector<4x256xf32>
    %64 = arith.truncf %63 : vector<4x256xf32> to vector<4x256xbf16>
    %c28 = arith.constant 28 : index
    %c0_28 = arith.constant 0 : index
    %65 = vector.load %arg11[%c28, %c0_28] : memref<72x256xbf16, #tpu.memory_space<vmem>>, vector<4x256xbf16>
    tpu.vector_store %arg11[%c28, %c0_28], %64 {strides = array<i32>} : memref<72x256xbf16, #tpu.memory_space<vmem>>, vector<4x256xbf16>,
    %c239_i32 = arith.constant 239 : i32
    %66 = tpu.dynamic_rotate %18 by %c239_i32 dim 1 : vector<4x256xf32>, i32 -> vector<4x256xf32>
    %c8_29 = arith.constant 8 : index
    %c0_30 = arith.constant 0 : index
    %67 = vector.load %arg1[%c8_29, %c0_30] : memref<9x256xf32, #tpu.memory_space<vmem>>, vector<1x256xf32>
    %68 = vector.broadcast %67 : vector<1x256xf32> to vector<4x256xf32>
    %69 = arith.mulf %66, %68 : vector<4x256xf32>
    %70 = arith.truncf %69 : vector<4x256xf32> to vector<4x256xbf16>
    %c32 = arith.constant 32 : index
    %c0_31 = arith.constant 0 : index
    %71 = vector.load %arg11[%c32, %c0_31] : memref<72x256xbf16, #tpu.memory_space<vmem>>, vector<4x256xbf16>
    tpu.vector_store %arg11[%c32, %c0_31], %70 {strides = array<i32>} : memref<72x256xbf16, #tpu.memory_space<vmem>>, vector<4x256xbf16>,
    %c0_32 = arith.constant 0 : index
    %c0_33 = arith.constant 0 : index
    %72 = vector.load %arg11[%c0_32, %c0_33] : memref<72x256xbf16, #tpu.memory_space<vmem>>, vector<36x256xbf16>
    %c0_34 = arith.constant 0 : index
    %c0_35 = arith.constant 0 : index
    %73 = vector.load %arg4[%c0_34, %c0_35] : memref<2x36xbf16, #tpu.memory_space<vmem>>, vector<2x36xbf16>
    %cst_36 = arith.constant dense<0.000000e+00> : vector<2x256xf32>
    %74 = tpu.matmul %73, %72, %cst_36 {dimension_numbers = #tpu.dot_dimension_numbers<[1], [0], [0], [1], [0, 0, 1, 1], [], []>} : vector<2x36xbf16>, vector<36x256xbf16>, vector<2x256xf32> -> vector<2x256xf32>
    %c0_37 = arith.constant 0 : index
    %c0_38 = arith.constant 0 : index
    %75 = vector.load %arg5[%c0_37, %c0_38] : memref<2x1xf32, #tpu.memory_space<vmem>>, vector<2x1xf32>
    %76 = vector.broadcast %75 : vector<2x1xf32> to vector<2x256xf32>
    %77 = arith.addf %74, %76 : vector<2x256xf32>
    %cst_39 = arith.constant 0.000000e+00 : f32
    %78 = vector.broadcast %cst_39 : f32 to vector<2x256xf32>
    %79 = arith.maximumf %77, %78 : vector<2x256xf32>
    %c17_i32_40 = arith.constant 17 : i32
    %80 = tpu.dynamic_rotate %79 by %c17_i32_40 dim 1 : vector<2x256xf32>, i32 -> vector<2x256xf32>
    %c0_41 = arith.constant 0 : index
    %c0_42 = arith.constant 0 : index
    %81 = vector.load %arg1[%c0_41, %c0_42] : memref<9x256xf32, #tpu.memory_space<vmem>>, vector<1x256xf32>
    %82 = vector.broadcast %81 : vector<1x256xf32> to vector<2x256xf32>
    %83 = arith.mulf %80, %82 : vector<2x256xf32>
    %84 = arith.truncf %83 : vector<2x256xf32> to vector<2x256xbf16>
    %c0_43 = arith.constant 0 : index
    %c0_44 = arith.constant 0 : index
    %85 = vector.load %arg11[%c0_43, %c0_44] : memref<72x256xbf16, #tpu.memory_space<vmem>>, vector<2x256xbf16>
    tpu.vector_store %arg11[%c0_43, %c0_44], %84 {strides = array<i32>} : memref<72x256xbf16, #tpu.memory_space<vmem>>, vector<2x256xbf16>,
    %c16_i32_45 = arith.constant 16 : i32
    %86 = tpu.dynamic_rotate %79 by %c16_i32_45 dim 1 : vector<2x256xf32>, i32 -> vector<2x256xf32>
    %c1_46 = arith.constant 1 : index
    %c0_47 = arith.constant 0 : index
    %87 = vector.load %arg1[%c1_46, %c0_47] : memref<9x256xf32, #tpu.memory_space<vmem>>, vector<1x256xf32>
    %88 = vector.broadcast %87 : vector<1x256xf32> to vector<2x256xf32>
    %89 = arith.mulf %86, %88 : vector<2x256xf32>
    %90 = arith.truncf %89 : vector<2x256xf32> to vector<2x256xbf16>
    %c2_48 = arith.constant 2 : index
    %c0_49 = arith.constant 0 : index
    %91 = vector.load %arg11[%c2_48, %c0_49] : memref<72x256xbf16, #tpu.memory_space<vmem>>, vector<2x256xbf16>
    tpu.vector_store %arg11[%c2_48, %c0_49], %90 {strides = array<i32>} : memref<72x256xbf16, #tpu.memory_space<vmem>>, vector<2x256xbf16>,
    %c15_i32_50 = arith.constant 15 : i32
    %92 = tpu.dynamic_rotate %79 by %c15_i32_50 dim 1 : vector<2x256xf32>, i32 -> vector<2x256xf32>
    %c2_51 = arith.constant 2 : index
    %c0_52 = arith.constant 0 : index
    %93 = vector.load %arg1[%c2_51, %c0_52] : memref<9x256xf32, #tpu.memory_space<vmem>>, vector<1x256xf32>
    %94 = vector.broadcast %93 : vector<1x256xf32> to vector<2x256xf32>
    %95 = arith.mulf %92, %94 : vector<2x256xf32>
    %96 = arith.truncf %95 : vector<2x256xf32> to vector<2x256xbf16>
    %c4_53 = arith.constant 4 : index
    %c0_54 = arith.constant 0 : index
    %97 = vector.load %arg11[%c4_53, %c0_54] : memref<72x256xbf16, #tpu.memory_space<vmem>>, vector<2x256xbf16>
    tpu.vector_store %arg11[%c4_53, %c0_54], %96 {strides = array<i32>} : memref<72x256xbf16, #tpu.memory_space<vmem>>, vector<2x256xbf16>,
    %c1_i32_55 = arith.constant 1 : i32
    %98 = tpu.dynamic_rotate %79 by %c1_i32_55 dim 1 : vector<2x256xf32>, i32 -> vector<2x256xf32>
    %c3_56 = arith.constant 3 : index
    %c0_57 = arith.constant 0 : index
    %99 = vector.load %arg1[%c3_56, %c0_57] : memref<9x256xf32, #tpu.memory_space<vmem>>, vector<1x256xf32>
    %100 = vector.broadcast %99 : vector<1x256xf32> to vector<2x256xf32>
    %101 = arith.mulf %98, %100 : vector<2x256xf32>
    %102 = arith.truncf %101 : vector<2x256xf32> to vector<2x256xbf16>
    %c6_58 = arith.constant 6 : index
    %c0_59 = arith.constant 0 : index
    %103 = vector.load %arg11[%c6_58, %c0_59] : memref<72x256xbf16, #tpu.memory_space<vmem>>, vector<2x256xbf16>
    tpu.vector_store %arg11[%c6_58, %c0_59], %102 {strides = array<i32>} : memref<72x256xbf16, #tpu.memory_space<vmem>>, vector<2x256xbf16>,
    %c4_60 = arith.constant 4 : index
    %c0_61 = arith.constant 0 : index
    %104 = vector.load %arg1[%c4_60, %c0_61] : memref<9x256xf32, #tpu.memory_space<vmem>>, vector<1x256xf32>
    %105 = vector.broadcast %104 : vector<1x256xf32> to vector<2x256xf32>
    %106 = arith.mulf %79, %105 : vector<2x256xf32>
    %107 = arith.truncf %106 : vector<2x256xf32> to vector<2x256xbf16>
    %c8_62 = arith.constant 8 : index
    %c0_63 = arith.constant 0 : index
    %108 = vector.load %arg11[%c8_62, %c0_63] : memref<72x256xbf16, #tpu.memory_space<vmem>>, vector<2x256xbf16>
    tpu.vector_store %arg11[%c8_62, %c0_63], %107 {strides = array<i32>} : memref<72x256xbf16, #tpu.memory_space<vmem>>, vector<2x256xbf16>,
    %c255_i32_64 = arith.constant 255 : i32
    %109 = tpu.dynamic_rotate %79 by %c255_i32_64 dim 1 : vector<2x256xf32>, i32 -> vector<2x256xf32>
    %c5_65 = arith.constant 5 : index
    %c0_66 = arith.constant 0 : index
    %110 = vector.load %arg1[%c5_65, %c0_66] : memref<9x256xf32, #tpu.memory_space<vmem>>, vector<1x256xf32>
    %111 = vector.broadcast %110 : vector<1x256xf32> to vector<2x256xf32>
    %112 = arith.mulf %109, %111 : vector<2x256xf32>
    %113 = arith.truncf %112 : vector<2x256xf32> to vector<2x256xbf16>
    %c10 = arith.constant 10 : index
    %c0_67 = arith.constant 0 : index
    %114 = vector.load %arg11[%c10, %c0_67] : memref<72x256xbf16, #tpu.memory_space<vmem>>, vector<2x256xbf16>
    tpu.vector_store %arg11[%c10, %c0_67], %113 {strides = array<i32>} : memref<72x256xbf16, #tpu.memory_space<vmem>>, vector<2x256xbf16>,
    %c241_i32_68 = arith.constant 241 : i32
    %115 = tpu.dynamic_rotate %79 by %c241_i32_68 dim 1 : vector<2x256xf32>, i32 -> vector<2x256xf32>
    %c6_69 = arith.constant 6 : index
    %c0_70 = arith.constant 0 : index
    %116 = vector.load %arg1[%c6_69, %c0_70] : memref<9x256xf32, #tpu.memory_space<vmem>>, vector<1x256xf32>
    %117 = vector.broadcast %116 : vector<1x256xf32> to vector<2x256xf32>
    %118 = arith.mulf %115, %117 : vector<2x256xf32>
    %119 = arith.truncf %118 : vector<2x256xf32> to vector<2x256xbf16>
    %c12_71 = arith.constant 12 : index
    %c0_72 = arith.constant 0 : index
    %120 = vector.load %arg11[%c12_71, %c0_72] : memref<72x256xbf16, #tpu.memory_space<vmem>>, vector<2x256xbf16>
    tpu.vector_store %arg11[%c12_71, %c0_72], %119 {strides = array<i32>} : memref<72x256xbf16, #tpu.memory_space<vmem>>, vector<2x256xbf16>,
    %c240_i32_73 = arith.constant 240 : i32
    %121 = tpu.dynamic_rotate %79 by %c240_i32_73 dim 1 : vector<2x256xf32>, i32 -> vector<2x256xf32>
    %c7_74 = arith.constant 7 : index
    %c0_75 = arith.constant 0 : index
    %122 = vector.load %arg1[%c7_74, %c0_75] : memref<9x256xf32, #tpu.memory_space<vmem>>, vector<1x256xf32>
    %123 = vector.broadcast %122 : vector<1x256xf32> to vector<2x256xf32>
    %124 = arith.mulf %121, %123 : vector<2x256xf32>
    %125 = arith.truncf %124 : vector<2x256xf32> to vector<2x256xbf16>
    %c14 = arith.constant 14 : index
    %c0_76 = arith.constant 0 : index
    %126 = vector.load %arg11[%c14, %c0_76] : memref<72x256xbf16, #tpu.memory_space<vmem>>, vector<2x256xbf16>
    tpu.vector_store %arg11[%c14, %c0_76], %125 {strides = array<i32>} : memref<72x256xbf16, #tpu.memory_space<vmem>>, vector<2x256xbf16>,
    %c239_i32_77 = arith.constant 239 : i32
    %127 = tpu.dynamic_rotate %79 by %c239_i32_77 dim 1 : vector<2x256xf32>, i32 -> vector<2x256xf32>
    %c8_78 = arith.constant 8 : index
    %c0_79 = arith.constant 0 : index
    %128 = vector.load %arg1[%c8_78, %c0_79] : memref<9x256xf32, #tpu.memory_space<vmem>>, vector<1x256xf32>
    %129 = vector.broadcast %128 : vector<1x256xf32> to vector<2x256xf32>
    %130 = arith.mulf %127, %129 : vector<2x256xf32>
    %131 = arith.truncf %130 : vector<2x256xf32> to vector<2x256xbf16>
    %c16_80 = arith.constant 16 : index
    %c0_81 = arith.constant 0 : index
    %132 = vector.load %arg11[%c16_80, %c0_81] : memref<72x256xbf16, #tpu.memory_space<vmem>>, vector<2x256xbf16>
    tpu.vector_store %arg11[%c16_80, %c0_81], %131 {strides = array<i32>} : memref<72x256xbf16, #tpu.memory_space<vmem>>, vector<2x256xbf16>,
    %c0_82 = arith.constant 0 : index
    %c0_83 = arith.constant 0 : index
    %133 = vector.load %arg11[%c0_82, %c0_83] : memref<72x256xbf16, #tpu.memory_space<vmem>>, vector<18x256xbf16>
    %c0_84 = arith.constant 0 : index
    %c0_85 = arith.constant 0 : index
    %134 = vector.load %arg6[%c0_84, %c0_85] : memref<1x18xbf16, #tpu.memory_space<vmem>>, vector<1x18xbf16>
    %cst_86 = arith.constant dense<0.000000e+00> : vector<1x256xf32>
    %135 = tpu.matmul %134, %133, %cst_86 {dimension_numbers = #tpu.dot_dimension_numbers<[1], [0], [0], [1], [0, 0, 1, 1], [], []>} : vector<1x18xbf16>, vector<18x256xbf16>, vector<1x256xf32> -> vector<1x256xf32>
    %c0_87 = arith.constant 0 : index
    %c0_88 = arith.constant 0 : index
    %136 = vector.load %arg7[%c0_87, %c0_88] : memref<1x1xf32, #tpu.memory_space<vmem>>, vector<1x1xf32>
    %137 = vector.broadcast %136 : vector<1x1xf32> to vector<1x256xf32>
    %138 = arith.addf %135, %137 : vector<1x256xf32>
    %cst_89 = arith.constant 0.000000e+00 : f32
    %139 = vector.broadcast %cst_89 : f32 to vector<1x256xf32>
    %140 = arith.subf %139, %138 : vector<1x256xf32>
    %141 = math.exp %140 : vector<1x256xf32>
    %cst_90 = arith.constant 1.000000e+00 : f32
    %142 = vector.broadcast %cst_90 : f32 to vector<1x256xf32>
    %143 = arith.addf %142, %141 : vector<1x256xf32>
    %cst_91 = arith.constant 1.000000e+00 : f32
    %144 = vector.broadcast %cst_91 : f32 to vector<1x256xf32>
    %145 = arith.divf %144, %143 : vector<1x256xf32>
    %146 = arith.subf %2, %5 : vector<8x256xf32>
    %147 = vector.broadcast %145 : vector<1x256xf32> to vector<8x256xf32>
    %148 = arith.mulf %146, %147 : vector<8x256xf32>
    %149 = arith.addf %5, %148 : vector<8x256xf32>
    %c17_i32_92 = arith.constant 17 : i32
    %150 = tpu.dynamic_rotate %149 by %c17_i32_92 dim 1 : vector<8x256xf32>, i32 -> vector<8x256xf32>
    %c0_93 = arith.constant 0 : index
    %c0_94 = arith.constant 0 : index
    %151 = vector.load %arg1[%c0_93, %c0_94] : memref<9x256xf32, #tpu.memory_space<vmem>>, vector<1x256xf32>
    %152 = vector.broadcast %151 : vector<1x256xf32> to vector<8x256xf32>
    %153 = arith.mulf %150, %152 : vector<8x256xf32>
    %154 = arith.truncf %153 : vector<8x256xf32> to vector<8x256xbf16>
    %c0_95 = arith.constant 0 : index
    %c0_96 = arith.constant 0 : index
    %155 = vector.load %arg11[%c0_95, %c0_96] : memref<72x256xbf16, #tpu.memory_space<vmem>>, vector<8x256xbf16>
    tpu.vector_store %arg11[%c0_95, %c0_96], %154 {strides = array<i32>} : memref<72x256xbf16, #tpu.memory_space<vmem>>, vector<8x256xbf16>,
    %c16_i32_97 = arith.constant 16 : i32
    %156 = tpu.dynamic_rotate %149 by %c16_i32_97 dim 1 : vector<8x256xf32>, i32 -> vector<8x256xf32>
    %c1_98 = arith.constant 1 : index
    %c0_99 = arith.constant 0 : index
    %157 = vector.load %arg1[%c1_98, %c0_99] : memref<9x256xf32, #tpu.memory_space<vmem>>, vector<1x256xf32>
    %158 = vector.broadcast %157 : vector<1x256xf32> to vector<8x256xf32>
    %159 = arith.mulf %156, %158 : vector<8x256xf32>
    %160 = arith.truncf %159 : vector<8x256xf32> to vector<8x256xbf16>
    %c8_100 = arith.constant 8 : index
    %c0_101 = arith.constant 0 : index
    %161 = vector.load %arg11[%c8_100, %c0_101] : memref<72x256xbf16, #tpu.memory_space<vmem>>, vector<8x256xbf16>
    tpu.vector_store %arg11[%c8_100, %c0_101], %160 {strides = array<i32>} : memref<72x256xbf16, #tpu.memory_space<vmem>>, vector<8x256xbf16>,
    %c15_i32_102 = arith.constant 15 : i32
    %162 = tpu.dynamic_rotate %149 by %c15_i32_102 dim 1 : vector<8x256xf32>, i32 -> vector<8x256xf32>
    %c2_103 = arith.constant 2 : index
    %c0_104 = arith.constant 0 : index
    %163 = vector.load %arg1[%c2_103, %c0_104] : memref<9x256xf32, #tpu.memory_space<vmem>>, vector<1x256xf32>
    %164 = vector.broadcast %163 : vector<1x256xf32> to vector<8x256xf32>
    %165 = arith.mulf %162, %164 : vector<8x256xf32>
    %166 = arith.truncf %165 : vector<8x256xf32> to vector<8x256xbf16>
    %c16_105 = arith.constant 16 : index
    %c0_106 = arith.constant 0 : index
    %167 = vector.load %arg11[%c16_105, %c0_106] : memref<72x256xbf16, #tpu.memory_space<vmem>>, vector<8x256xbf16>
    tpu.vector_store %arg11[%c16_105, %c0_106], %166 {strides = array<i32>} : memref<72x256xbf16, #tpu.memory_space<vmem>>, vector<8x256xbf16>,
    %c1_i32_107 = arith.constant 1 : i32
    %168 = tpu.dynamic_rotate %149 by %c1_i32_107 dim 1 : vector<8x256xf32>, i32 -> vector<8x256xf32>
    %c3_108 = arith.constant 3 : index
    %c0_109 = arith.constant 0 : index
    %169 = vector.load %arg1[%c3_108, %c0_109] : memref<9x256xf32, #tpu.memory_space<vmem>>, vector<1x256xf32>
    %170 = vector.broadcast %169 : vector<1x256xf32> to vector<8x256xf32>
    %171 = arith.mulf %168, %170 : vector<8x256xf32>
    %172 = arith.truncf %171 : vector<8x256xf32> to vector<8x256xbf16>
    %c24_110 = arith.constant 24 : index
    %c0_111 = arith.constant 0 : index
    %173 = vector.load %arg11[%c24_110, %c0_111] : memref<72x256xbf16, #tpu.memory_space<vmem>>, vector<8x256xbf16>
    tpu.vector_store %arg11[%c24_110, %c0_111], %172 {strides = array<i32>} : memref<72x256xbf16, #tpu.memory_space<vmem>>, vector<8x256xbf16>,
    %c4_112 = arith.constant 4 : index
    %c0_113 = arith.constant 0 : index
    %174 = vector.load %arg1[%c4_112, %c0_113] : memref<9x256xf32, #tpu.memory_space<vmem>>, vector<1x256xf32>
    %175 = vector.broadcast %174 : vector<1x256xf32> to vector<8x256xf32>
    %176 = arith.mulf %149, %175 : vector<8x256xf32>
    %177 = arith.truncf %176 : vector<8x256xf32> to vector<8x256xbf16>
    %c32_114 = arith.constant 32 : index
    %c0_115 = arith.constant 0 : index
    %178 = vector.load %arg11[%c32_114, %c0_115] : memref<72x256xbf16, #tpu.memory_space<vmem>>, vector<8x256xbf16>
    tpu.vector_store %arg11[%c32_114, %c0_115], %177 {strides = array<i32>} : memref<72x256xbf16, #tpu.memory_space<vmem>>, vector<8x256xbf16>,
    %c255_i32_116 = arith.constant 255 : i32
    %179 = tpu.dynamic_rotate %149 by %c255_i32_116 dim 1 : vector<8x256xf32>, i32 -> vector<8x256xf32>
    %c5_117 = arith.constant 5 : index
    %c0_118 = arith.constant 0 : index
    %180 = vector.load %arg1[%c5_117, %c0_118] : memref<9x256xf32, #tpu.memory_space<vmem>>, vector<1x256xf32>
    %181 = vector.broadcast %180 : vector<1x256xf32> to vector<8x256xf32>
    %182 = arith.mulf %179, %181 : vector<8x256xf32>
    %183 = arith.truncf %182 : vector<8x256xf32> to vector<8x256xbf16>
    %c40 = arith.constant 40 : index
    %c0_119 = arith.constant 0 : index
    %184 = vector.load %arg11[%c40, %c0_119] : memref<72x256xbf16, #tpu.memory_space<vmem>>, vector<8x256xbf16>
    tpu.vector_store %arg11[%c40, %c0_119], %183 {strides = array<i32>} : memref<72x256xbf16, #tpu.memory_space<vmem>>, vector<8x256xbf16>,
    %c241_i32_120 = arith.constant 241 : i32
    %185 = tpu.dynamic_rotate %149 by %c241_i32_120 dim 1 : vector<8x256xf32>, i32 -> vector<8x256xf32>
    %c6_121 = arith.constant 6 : index
    %c0_122 = arith.constant 0 : index
    %186 = vector.load %arg1[%c6_121, %c0_122] : memref<9x256xf32, #tpu.memory_space<vmem>>, vector<1x256xf32>
    %187 = vector.broadcast %186 : vector<1x256xf32> to vector<8x256xf32>
    %188 = arith.mulf %185, %187 : vector<8x256xf32>
    %189 = arith.truncf %188 : vector<8x256xf32> to vector<8x256xbf16>
    %c48 = arith.constant 48 : index
    %c0_123 = arith.constant 0 : index
    %190 = vector.load %arg11[%c48, %c0_123] : memref<72x256xbf16, #tpu.memory_space<vmem>>, vector<8x256xbf16>
    tpu.vector_store %arg11[%c48, %c0_123], %189 {strides = array<i32>} : memref<72x256xbf16, #tpu.memory_space<vmem>>, vector<8x256xbf16>,
    %c240_i32_124 = arith.constant 240 : i32
    %191 = tpu.dynamic_rotate %149 by %c240_i32_124 dim 1 : vector<8x256xf32>, i32 -> vector<8x256xf32>
    %c7_125 = arith.constant 7 : index
    %c0_126 = arith.constant 0 : index
    %192 = vector.load %arg1[%c7_125, %c0_126] : memref<9x256xf32, #tpu.memory_space<vmem>>, vector<1x256xf32>
    %193 = vector.broadcast %192 : vector<1x256xf32> to vector<8x256xf32>
    %194 = arith.mulf %191, %193 : vector<8x256xf32>
    %195 = arith.truncf %194 : vector<8x256xf32> to vector<8x256xbf16>
    %c56 = arith.constant 56 : index
    %c0_127 = arith.constant 0 : index
    %196 = vector.load %arg11[%c56, %c0_127] : memref<72x256xbf16, #tpu.memory_space<vmem>>, vector<8x256xbf16>
    tpu.vector_store %arg11[%c56, %c0_127], %195 {strides = array<i32>} : memref<72x256xbf16, #tpu.memory_space<vmem>>, vector<8x256xbf16>,
    %c239_i32_128 = arith.constant 239 : i32
    %197 = tpu.dynamic_rotate %149 by %c239_i32_128 dim 1 : vector<8x256xf32>, i32 -> vector<8x256xf32>
    %c8_129 = arith.constant 8 : index
    %c0_130 = arith.constant 0 : index
    %198 = vector.load %arg1[%c8_129, %c0_130] : memref<9x256xf32, #tpu.memory_space<vmem>>, vector<1x256xf32>
    %199 = vector.broadcast %198 : vector<1x256xf32> to vector<8x256xf32>
    %200 = arith.mulf %197, %199 : vector<8x256xf32>
    %201 = arith.truncf %200 : vector<8x256xf32> to vector<8x256xbf16>
    %c64 = arith.constant 64 : index
    %c0_131 = arith.constant 0 : index
    %202 = vector.load %arg11[%c64, %c0_131] : memref<72x256xbf16, #tpu.memory_space<vmem>>, vector<8x256xbf16>
    tpu.vector_store %arg11[%c64, %c0_131], %201 {strides = array<i32>} : memref<72x256xbf16, #tpu.memory_space<vmem>>, vector<8x256xbf16>,
    %c0_132 = arith.constant 0 : index
    %c0_133 = arith.constant 0 : index
    %203 = vector.load %arg11[%c0_132, %c0_133] : memref<72x256xbf16, #tpu.memory_space<vmem>>, vector<72x256xbf16>
    %c0_134 = arith.constant 0 : index
    %c0_135 = arith.constant 0 : index
    %204 = vector.load %arg8[%c0_134, %c0_135] : memref<16x72xbf16, #tpu.memory_space<vmem>>, vector<16x72xbf16>
    %cst_136 = arith.constant dense<0.000000e+00> : vector<16x256xf32>
    %205 = tpu.matmul %204, %203, %cst_136 {dimension_numbers = #tpu.dot_dimension_numbers<[1], [0], [0], [1], [0, 0, 1, 1], [], []>} : vector<16x72xbf16>, vector<72x256xbf16>, vector<16x256xf32> -> vector<16x256xf32>
    %c0_137 = arith.constant 0 : index
    %c0_138 = arith.constant 0 : index
    %206 = vector.load %arg9[%c0_137, %c0_138] : memref<16x1xf32, #tpu.memory_space<vmem>>, vector<16x1xf32>
    %207 = vector.broadcast %206 : vector<16x1xf32> to vector<16x256xf32>
    %208 = arith.addf %205, %207 : vector<16x256xf32>
    %cst_139 = arith.constant 0.000000e+00 : f32
    %209 = vector.broadcast %cst_139 : f32 to vector<16x256xf32>
    %210 = arith.maximumf %208, %209 : vector<16x256xf32>
    %c0_140 = arith.constant 0 : index
    %c0_141 = arith.constant 0 : index
    %c0_142 = arith.constant 0 : index
    %211 = vector.load %arg10[%c0_140, %c0_141, %c0_142] : memref<1x16x256xf32, #tpu.memory_space<vmem>>, vector<1x16x256xf32>
    %212 = vector.shape_cast %211 : vector<1x16x256xf32> to vector<16x256xf32>
    %213 = vector.shape_cast %210 : vector<16x256xf32> to vector<1x16x256xf32>
    tpu.vector_store %arg10[%c0_140, %c0_141, %c0_142], %213 {strides = array<i32>} : memref<1x16x256xf32, #tpu.memory_space<vmem>>, vector<1x16x256xf32>,
    return
  }
  func.func @transform_0(%arg0: i32) -> (i32, i32) {
    %c0_i32 = arith.constant 0 : i32
    %c0_i32_0 = arith.constant 0 : i32
    %c0_i32_1 = arith.constant 0 : i32
    return %c0_i32, %c0_i32_0 : i32, i32
  }
  func.func @transform_1(%arg0: i32) -> (i32, i32, i32) {
    %c0_i32 = arith.constant 0 : i32
    %c0_i32_0 = arith.constant 0 : i32
    %c0_i32_1 = arith.constant 0 : i32
    return %arg0, %c0_i32, %c0_i32_0 : i32, i32, i32
  }
  func.func @transform_2(%arg0: i32) -> (i32, i32, i32) {
    %c0_i32 = arith.constant 0 : i32
    %c0_i32_0 = arith.constant 0 : i32
    %c0_i32_1 = arith.constant 0 : i32
    return %arg0, %c0_i32, %c0_i32_0 : i32, i32, i32
  }
  func.func @transform_3(%arg0: i32) -> (i32, i32) {
    %c0_i32 = arith.constant 0 : i32
    %c0_i32_0 = arith.constant 0 : i32
    %c0_i32_1 = arith.constant 0 : i32
    return %c0_i32, %c0_i32_0 : i32, i32
  }
  func.func @transform_4(%arg0: i32) -> (i32, i32) {
    %c0_i32 = arith.constant 0 : i32
    %c0_i32_0 = arith.constant 0 : i32
    %c0_i32_1 = arith.constant 0 : i32
    return %c0_i32, %c0_i32_0 : i32, i32
  }
  func.func @transform_5(%arg0: i32) -> (i32, i32) {
    %c0_i32 = arith.constant 0 : i32
    %c0_i32_0 = arith.constant 0 : i32
    %c0_i32_1 = arith.constant 0 : i32
    return %c0_i32, %c0_i32_0 : i32, i32
  }
  func.func @transform_6(%arg0: i32) -> (i32, i32) {
    %c0_i32 = arith.constant 0 : i32
    %c0_i32_0 = arith.constant 0 : i32
    %c0_i32_1 = arith.constant 0 : i32
    return %c0_i32, %c0_i32_0 : i32, i32
  }
  func.func @transform_7(%arg0: i32) -> (i32, i32) {
    %c0_i32 = arith.constant 0 : i32
    %c0_i32_0 = arith.constant 0 : i32
    %c0_i32_1 = arith.constant 0 : i32
    return %c0_i32, %c0_i32_0 : i32, i32
  }
  func.func @transform_8(%arg0: i32) -> (i32, i32) {
    %c0_i32 = arith.constant 0 : i32
    %c0_i32_0 = arith.constant 0 : i32
    %c0_i32_1 = arith.constant 0 : i32
    return %c0_i32, %c0_i32_0 : i32, i32
  }
  func.func @transform_9(%arg0: i32) -> (i32, i32, i32) {
    %c0_i32 = arith.constant 0 : i32
    %c0_i32_0 = arith.constant 0 : i32
    %c0_i32_1 = arith.constant 0 : i32
    return %arg0, %c0_i32, %c0_i32_0 : i32, i32, i32
  }
}

</mosaic_0001>

<bundles_post_ra>
// kernel: tpu_custom_call.1
= control target key start
LH: loop header
LB: loop body
LE: loop exit
PB: predicated region body
PF: predicated region fallthrough
CT: control target
= control target key end

     0   :  { %s2446_s0 = inlined_call_operand.hbm [shape: f32[9,256], index: 0, kind: input, shape index: {}]   ;;  %s2447_s1 = inlined_call_operand.vmem [shape: bf16[2,8,256], index: 1, kind: input, shape index: {}]   ;;  %s2448_s2 = inlined_call_operand.vmem [shape: bf16[2,8,256], index: 2, kind: input, shape index: {}]   ;;  %s2449_s3 = inlined_call_operand.vmem [shape: bf16[2,36], index: 3, kind: input, shape index: {}]   ;;  %s2450_s4 = inlined_call_operand.vmem [shape: f32[2,1], index: 4, kind: input, shape index: {}]   ;;  %s2451_s5 = inlined_call_operand.vmem [shape: bf16[1,18], index: 5, kind: input, shape index: {}]   ;;  %s2452_s6 = inlined_call_operand.<no memory space> [shape: f32[1,1], index: 6, kind: input, shape index: {}]   ;;  %s2453_s7 = inlined_call_operand.vmem [shape: bf16[16,72], index: 7, kind: input, shape index: {}]   ;;  %s2454_s8 = inlined_call_operand.vmem [shape: f32[16,1], index: 8, kind: input, shape index: {}]   ;;  %s2455_s9 = inlined_call_operand.hbm [shape: f32[2,16,256], index: 9, kind: output, shape index: {}]  }
   0x1   :  { %v14_v0 = vstv %s2452_s6 }
   0x2   :  { %15 = vst [vmem:[#allocation3] sm:$0x1] %v14_v0 }
   0x3   :  { %16 = vsyncpa [#allocation5], 0 }
   0x4   :  { %17 = vsyncpa [#allocation6], 0 }
   0x5   :  { %19 = vsyncpa [#allocation6 + $0x1], 0  ;;  %s2020_s11 = smov 0   ;;  %s2022_s12 = smov 0  }
   0x6   :  { %s2024_s13 = smov 0   ;;  %s2026_s14 = smov 0  }
   0x7 LB: > { %s2041_s6 = sadd.s32 4294967295, %s1951_s14   ;;  %s1661_s15 = sadd.s32 4294967294, %s1951_s14   ;;  %s1951_s14 = sphi %s2026_s14, %s2471_s14   ;;  %s1947_s13 = sphi %s2024_s13, %s2470_s13   ;;  %s1943_s12 = sphi %s2022_s12, %s2469_s12   ;;  %s1939_s11 = sphi %s2020_s11, %s2468_s11  }
   0x8   : > { %s2045_s16 = sadd.s32 1, %s1951_s14   ;;  %s231_s17 = sadd.s32 1, %s1947_s13 }
   0x9   : > { %s228_s18 = ssub.s32 %s1951_s14, %s2045_s16  ;;  %p241_p0 = scmp.ne.s32.totalorder %s1947_s13, %s1943_s12 }
   0xa   : > { %p229_p1 = scmp.eq.s32.totalorder %s228_s18, 0  ;;  %p242_p2 = scmp.eq.s32.totalorder %s2041_s6, 1 }
   0xb   : > { %p247_p3 = scmp.ne.s32.totalorder %s1943_s12, %s1939_s11  ;;  %p248_p4 = scmp.eq.s32.totalorder %s1661_s15, 1 }
   0xc   : > { %s2056_s19 = scalar_select %p229_p1, %s1947_s13, %s231_s17  }
   0xd   : > { %p2058_p5 = por %p242_p2, %p241_p0  ;;  %p2062_p6 = por %p248_p4, %p247_p3 }
   0xe   : > { %p1662_p7 = scmp.ge.s32.totalorder %s1951_s14, 1  ;;  %p255_p8 = scmp.lt.s32.totalorder %s1951_s14, 3 }
   0xf   : > { %s2459_s20 = scalar_select %p2058_p5, 1, 0 }
  0x10   : > { %s2460_s21 = scalar_select %p2062_p6, 1, 0 }
  0x11   : > { %p2456_p9 = scmp.eq.s32.totalorder %s2041_s6, 0  ;;  %p2069_p10 = pnand %p1662_p7, %p255_p8 }
  0x12   : > { %s1953_s23 = smov [#allocation4]   ;;  %s1857_s28 = scalar_lea.hbm %s2446_s0, 512 }
  0x13   : > { %s2461_s22 = scalar_select %p2069_p10, 1, 0 }
  0x14   : > { %s267_s24 = sshll.u32 %s1953_s23, 4  ;;  %p1767_p11 = pneg %p2069_p10  ;;  %s268_s24 = int_to_ptr.vmem [resolvable:$true] %s267_s24 }
  0x15   : > { %p1858_p13 = scmp.ne.s32.totalorder %s2446_s0, %s1857_s28  ;;  %p1864_p3 = scmp.lt.u32.totalorder %s1857_s28, %s2446_s0 }
  0x16   : > { %p2077_p12 = pnand %p2456_p9, %p1767_p11 }
  0x18   : > { %p1859_p0 = pneg %p2077_p12 }
  0x1a   : > { %p1860_p1 = pnand %p1859_p0, %p1858_p13 }
  0x1c   : > { %p1861_p2 = pneg %p1860_p1 }
  0x1e   : > { %p1866_p4 = pnand %p1864_p3, %p1861_p2 }
  0x20   : > { %1869 = shalt.err (!%p1866_p4)
}
  0x21   : > { %s1870_s17 = scalar_lea.vmem %s268_s24, 512  ;;  %p1878_p9 = scmp.lt.s32.totalorder %s268_s24, %s268_s24 }
  0x22   : > { %p1871_p7 = scmp.ne.s32.totalorder %s268_s24, %s1870_s17  ;;  %p1879_p6 = scmp.lt.s32.totalorder %s1870_s17, %s1870_s17 }
  0x24   : > { %p1873_p8 = pnand %p1871_p7, %p1859_p0  ;;  %p1880_p5 = por %p1879_p6, %p1878_p9 }
  0x26   : > { %p1874_p11 = pneg %p1873_p8 }
  0x28   : > { %p1881_p10 = pnand %p1880_p5, %p1874_p11 }
  0x2a   : > { %1884 = shalt.err (!%p1881_p10)
}
  0x2b   : > { %s1954_s18 = smov 256   ;;  %s1955_s23 = smov 16  }
  0x2c   : > { %1770 = dma.hbm_to_vmem [thread:$0]  (!%p2077_p12), %s2446_s0, 512, %s268_s24, [#allocation5], %s1954_s18, %s1954_s18, %s1955_s23  }
  0x2d   : > { %p2463_p13 = scmp.ne.s32.totalorder %s2461_s22, 0 }
  0x2e   : > { %p2464_p1 = scmp.eq.s32.totalorder (!%p2463_p13), %s2041_s6, 0 }
  0x2f   : > { %317 = sbr.rel (%p2463_p13) target bundleno = 1260 (0x4ec), region = 56 }
  0x36   : > { %1930 = dma.done.wait (%p2464_p1), [#allocation5], 512   ;;  %p2465_p0 = pmov %p2464_p1 }
  0x37   : > { %p358_p5 = scmp.lt.s32.totalorder %s2041_s6, 1  ;;  %v441_v10 = vlaneseq  ;;  %vm428_vm0 = vcmask 1040384   ;;  %vm431_vm1 = vcmask 1041408   ;;  %vm434_vm2 = vcmask 1042432   ;;  %s1956_s17 = smov 1  }
  0x38   : > { %1932 = vsyncadd (%p2465_p0), [#allocation5], 4294966784  ;;  %v565_v57 = vld [vmem:[#allocation4 + $0x4] ss:$8 sm:$0x3]  ;;  %s1957_s18 = smov 16  }
  0x39   : > { %s359_s28 = scalar_select %p358_p5, %s2041_s6, 1  ;;  %v449_v47 = vshrl.u32 %v441_v10, 7  ;;  %vm751_vm11 = vcmask 293888   ;;  %vm1094_vm12 = vcmask 146432   ;;  %vm1503_vm13 = vcmask 1043456  }
  0x3a   : > { %s1958_s23 = smov 17   ;;  %s1959_s26 = smov 15   ;;  %vm1499_vm14 = vcmask 588800  }
  0x3b   : > { %s1731_s29 = sshll.u32 %s359_s28, 3  ;;  %v2134_v60 = vsub.s32 0, %v449_v47  ;;  %v2137_v62 = vsub.s32 1, %v449_v47  ;;  %s1960_s27 = smov 127  }
  0x3c   : > { %s362_s10 = scalar_lea.vmem %s2447_s1, %s1731_s29  ;;  %s367_s22 = scalar_lea.vmem %s2448_s2, %s1731_s29 }
  0x3d   : > { %v369_v1 = vld [vmem:[%s362_s10] sm:$0xff]  ;;  %s1961_s28 = smov 112   ;;  %s1962_s29 = smov 113  }
  0x3e   : > { %v372_v2 = vld [vmem:[%s367_s22] sm:$0xff]  ;;  %v2111_v3 = vunpack.c.l.bf16 %v369_v1  ;;  %v2115_v5 = vunpack.c.h.bf16 %v369_v1  ;;  %v570_v1 = vrot.slane %v565_v57, %v2134_v60  ;;  %s1963_s30 = smov 111   ;;  %s1760_s22 = sshll.u32 %s2041_s6, 9 }
  0x3f   : > { %v2113_v4 = vunpack.c.l.bf16 %v372_v2  ;;  %v2117_v6 = vunpack.c.h.bf16 %v372_v2  ;;  %v574_v2 = vrot.slane %v565_v57, %v2137_v62  ;;  %p2466_p9 = scmp.ne.s32.totalorder %s2459_s20, 0  ;;  %s1965_s10 = smov [#allocation7]  }
  0x40   : > { %v375_v7 = vrot.slane %v2111_v3, 4  ;;  %v381_v9 = vrot.slane %v2115_v5, 4 }
  0x41   : > { %v402_v8 = vrot.slane %v2113_v4, 4  ;;  %v408_v11 = vrot.slane %v2117_v6, 4 }
  0x42   : > { %v376_v12 = vadd.f32 %v375_v7, %v2111_v3  ;;  %v391_v13 = vmax.f32 %v2111_v3, %v375_v7  ;;  %v382_v16 = vadd.f32 %v381_v9, %v2115_v5  ;;  %v397_v17 = vmax.f32 %v2115_v5, %v381_v9 }
  0x43   : > { %v403_v14 = vadd.f32 %v402_v8, %v2113_v4  ;;  %v417_v15 = vmax.f32 %v2113_v4, %v402_v8  ;;  %v409_v18 = vadd.f32 %v408_v11, %v2117_v6  ;;  %v423_v19 = vmax.f32 %v2117_v6, %v408_v11 }
  0x44   : > { %v377_v20 = vrot.slane %v376_v12, 2  ;;  %v392_v21 = vrot.slane %v391_v13, 2  ;;  %v383_v24 = vrot.slane %v382_v16, 2  ;;  %v398_v25 = vrot.slane %v397_v17, 2 }
  0x45   : > { %v404_v22 = vrot.slane %v403_v14, 2  ;;  %v418_v23 = vrot.slane %v417_v15, 2  ;;  %v410_v26 = vrot.slane %v409_v18, 2  ;;  %v424_v27 = vrot.slane %v423_v19, 2 }
  0x46   : > { %v378_v28 = vadd.f32 %v377_v20, %v376_v12  ;;  %v393_v29 = vmax.f32 %v391_v13, %v392_v21  ;;  %v384_v32 = vadd.f32 %v383_v24, %v382_v16  ;;  %v399_v33 = vmax.f32 %v397_v17, %v398_v25  ;;  %v720_v13 = vld [vmem:[%s2450_s4] sm:$0x3]  ;;  %v477_v16 = vld [vmem:[#allocation4 + $0x1] ss:$8 sm:$0x3] }
  0x47   : > { %v405_v30 = vadd.f32 %v404_v22, %v403_v14  ;;  %v419_v31 = vmax.f32 %v417_v15, %v418_v23  ;;  %v411_v34 = vadd.f32 %v410_v26, %v409_v18  ;;  %v425_v35 = vmax.f32 %v423_v19, %v424_v27  ;;  %v540_v15 = vld [vmem:[#allocation4 + $0x3] ss:$8 sm:$0x3]  ;;  %v446_v21 = vld [vmem:[#allocation4] ss:$8 sm:$0x3] }
  0x48   : > { %v379_v36 = vrot.slane %v378_v28, 1  ;;  %v394_v37 = vrot.slane %v393_v29, 1  ;;  %v385_v40 = vrot.slane %v384_v32, 1  ;;  %v400_v41 = vrot.slane %v399_v33, 1 }
  0x49   : > { %v406_v38 = vrot.slane %v405_v30, 1  ;;  %v420_v39 = vrot.slane %v419_v31, 1  ;;  %v412_v42 = vrot.slane %v411_v34, 1  ;;  %v426_v46 = vrot.slane %v425_v35, 1 }
  0x4a   : > { %v380_v43 = vadd.f32 %v379_v36, %v378_v28  ;;  %v395_v44 = vmax.f32 %v393_v29, %v394_v37  ;;  %v386_v48 = vadd.f32 %v385_v40, %v384_v32  ;;  %v401_v49 = vmax.f32 %v399_v33, %v400_v41 }
  0x4b   : > { %v407_v45 = vadd.f32 %v406_v38, %v405_v30  ;;  %v413_v50 = vadd.f32 %v412_v42, %v411_v34  ;;  %v421_v53 = vmax.f32 %v419_v31, %v420_v39  ;;  %v427_v58 = vmax.f32 %v425_v35, %v426_v46  ;;  %v509_v35 = vld [vmem:[#allocation4 + $0x2] ss:$8 sm:$0x3] }
  0x4c   : > { %v388_v51 = vmul.f32 0.125, %v380_v43  ;;  %v389_v54 = vmul.f32 0.125, %v386_v48  ;;  %v1964_v12 = vmov 0   ;;  %v2168_v14 = vand.u32 127, %v441_v10 }
  0x4d   : > { %v414_v52 = vmul.f32 0.125, %v407_v45  ;;  %v415_v55 = vmul.f32 0.125, %v413_v50  ;;  %793 = vmatprep.mubr.bf16.mxu0 %v1964_v12  ;;  %1823 = vset.pattern.permute.xlu0 %v1964_v12  ;;  %v545_v19 = vrot.slane %v540_v15, %v2134_v60  ;;  %v549_v20 = vrot.slane %v540_v15, %v2137_v62  ;;  %v596_v48 = vld [vmem:[#allocation4 + $0x5] ss:$8 sm:$0x3] }
  0x4e   : > { %v429_v56 = vsel %vm428_vm0, %v388_v51, %v395_v44  ;;  %v430_v61 = vsel %vm428_vm0, %v389_v54, %v401_v49  ;;  %1542 = vmatprep.mubr.bf16.mxu1 %v1964_v12  ;;  %1824 = vset.pattern.permute.xlu1 %v1964_v12  ;;  %vm536_vm3 = vcmp.lt.s32.totalorder %v2168_v14, 1  ;;  %vm473_vm4 = vcmp.lt.s32.totalorder %v2168_v14, 16 }
  0x4f   : > { %v432_v59 = vsel %vm431_vm1, %v429_v56, %v414_v52  ;;  %v433_v0 = vsel %vm431_vm1, %v430_v61, %v415_v55  ;;  %v482_v22 = vrot.slane %v477_v16, %v2134_v60  ;;  %v486_v23 = vrot.slane %v477_v16, %v2137_v62 }
  0x50   : > { %v435_v63 = vsel %vm434_vm2, %v432_v59, %v421_v53  ;;  %v436_v7 = vsel %vm434_vm2, %v433_v0, %v427_v58  ;;  %vm443_vm5 = vcmp.lt.s32.totalorder %v2168_v14, 17  ;;  %v451_v25 = vrot.slane %v446_v21, %v2134_v60  ;;  %v659_v58 = vld [vmem:[#allocation4 + $0x7] ss:$8 sm:$0x3] }
  0x51   : > { %532 = vrot.lane.b32.xlu1 %v435_v63, %s1956_s17  ;;  %469 = vrot.lane.b32.xlu0 %v435_v63, %s1957_s18  ;;  %v577_v8 = vmul.f32 %v570_v1, %v435_v63  ;;  %v578_v9 = vmul.f32 %v574_v2, %v436_v7  ;;  %v455_v26 = vrot.slane %v446_v21, %v2137_v62  ;;  %vm505_vm6 = vcmp.lt.s32.totalorder %v2168_v14, 15 }
  0x52   : > { %v514_v42 = vrot.slane %v509_v35, %v2134_v60  ;;  %v518_v43 = vrot.slane %v509_v35, %v2137_v62  ;;  %vm592_vm7 = vcmp.lt.s32.totalorder %v2168_v14, 127  ;;  %v601_v56 = vrot.slane %v596_v48, %v2134_v60 }
  0x53   : > { %v1737_v11 = vpack.c.bf16 %v578_v9, %v577_v8  ;;  %v605_v57 = vrot.slane %v596_v48, %v2137_v62  ;;  %vm655_vm8 = vcmp.lt.s32.totalorder %v2168_v14, 112  ;;  %v664_v8 = vrot.slane %v659_v58, %v2134_v60 }
  0x54   : > { %v668_v9 = vrot.slane %v659_v58, %v2137_v62  ;;  %vm624_vm9 = vcmp.lt.s32.totalorder %v2168_v14, 113  ;;  %vm687_vm10 = vcmp.lt.s32.totalorder %v2168_v14, 111 }
  0x55   : > { %534 = vrot.lane.b32.xlu1 %v436_v7, %s1956_s17  ;;  %471 = vrot.lane.b32.xlu0 %v436_v7, %s1957_s18  ;;  %587 = vst [vmem:[#allocation2 + $0x10] sm:$0x33] %v1737_v11  ;;  %v628_v11 = vld [vmem:[#allocation4 + $0x6] ss:$8 sm:$0x3] }
  0x59   : > { %439 = vrot.lane.b32.xlu1 %v436_v7, %s1958_s23  ;;  %437 = vrot.lane.b32.xlu0 %v435_v63, %s1958_s23 }
  0x5d   : > { %503 = vrot.lane.b32.xlu1 %v436_v7, %s1959_s26  ;;  %501 = vrot.lane.b32.xlu0 %v435_v63, %s1959_s26 }
  0x61   : > { %590 = vrot.lane.b32.xlu1 %v436_v7, %s1960_s27  ;;  %588 = vrot.lane.b32.xlu0 %v435_v63, %s1960_s27 }
  0x65   : > { %653 = vrot.lane.b32.xlu1 %v436_v7, %s1961_s28  ;;  %651 = vrot.lane.b32.xlu0 %v435_v63, %s1961_s28 }
  0x69   : > { %622 = vrot.lane.b32.xlu1 %v436_v7, %s1962_s29  ;;  %620 = vrot.lane.b32.xlu0 %v435_v63, %s1962_s29 }
  0x6d   : > { %685 = vrot.lane.b32.xlu1 %v436_v7, %s1963_s30  ;;  %683 = vrot.lane.b32.xlu0 %v435_v63, %s1963_s30 }
  0x71   : > { %723 = vperm.xlu0 %1823, %v720_v13  }
  0xc3   : > { %v533_v17 = vpop.permute.xlu1 %532  ;;  %v470_v18 = vpop.permute.xlu0 %469 }
  0xc7   : > { %v535_v24 = vpop.permute.xlu1 %534  ;;  %v472_v10 = vpop.permute.xlu0 %471 }
  0xc8   : > { %v537_v27 = vsel %vm536_vm3, %v533_v17, %v535_v24  ;;  %v538_v28 = vsel %vm536_vm3, %v535_v24, %v533_v17  ;;  %v474_v29 = vsel %vm473_vm4, %v470_v18, %v472_v10  ;;  %v475_v30 = vsel %vm473_vm4, %v472_v10, %v470_v18  ;;  %v691_v24 = vld [vmem:[#allocation4 + $0x10] ss:$8 sm:$0x3] }
  0xc9   : > { %v552_v31 = vmul.f32 %v545_v19, %v538_v28  ;;  %v553_v32 = vmul.f32 %v549_v20, %v537_v27  ;;  %v489_v33 = vmul.f32 %v482_v22, %v475_v30  ;;  %v490_v34 = vmul.f32 %v486_v23, %v474_v29 }
  0xca   : > { %v633_v19 = vrot.slane %v628_v11, %v2134_v60  ;;  %v637_v23 = vrot.slane %v628_v11, %v2137_v62  ;;  %v696_v30 = vrot.slane %v691_v24, %v2134_v60  ;;  %v700_v35 = vrot.slane %v691_v24, %v2137_v62 }
  0xcb   : > { %v1736_v36 = vpack.c.bf16 %v553_v32, %v552_v31  ;;  %v1734_v37 = vpack.c.bf16 %v490_v34, %v489_v33  ;;  %v440_v38 = vpop.permute.xlu1 %439  ;;  %v438_v39 = vpop.permute.xlu0 %437 }
  0xcc   : > { %v444_v40 = vsel %vm443_vm5, %v438_v39, %v440_v38  ;;  %v445_v41 = vsel %vm443_vm5, %v440_v38, %v438_v39 }
  0xcd   : > { %v561_v44 = vrot.slane %v1736_v36, 6  ;;  %v498_v45 = vrot.slane %v1734_v37, 6  ;;  %v458_v46 = vmul.f32 %v451_v25, %v445_v41  ;;  %v459_v47 = vmul.f32 %v455_v26, %v444_v40 }
  0xcf   : > { %563 = vst [vmem:[#allocation2 + $0x8] sm:$0xcc] %v561_v44  ;;  %500 = vst [vmem:[#allocation2] sm:$0xcc] %v498_v45  ;;  %v1733_v49 = vpack.c.bf16 %v459_v47, %v458_v46  ;;  %v504_v50 = vpop.permute.xlu1 %503  ;;  %v502_v51 = vpop.permute.xlu0 %501 }
  0xd0   : > { %v506_v52 = vsel %vm505_vm6, %v502_v51, %v504_v50  ;;  %v507_v53 = vsel %vm505_vm6, %v504_v50, %v502_v51  ;;  %v719_v50 = vld [vmem:[%s2449_s3] sm:$0x1] }
  0xd1   : > { %468 = vst [vmem:[#allocation2] sm:$0x33] %v1733_v49  ;;  %v521_v54 = vmul.f32 %v514_v42, %v507_v53  ;;  %v522_v55 = vmul.f32 %v518_v43, %v506_v52  ;;  %v923_v52 = vld [vmem:[#allocation4 + $0x4] ss:$8 sm:$0x3] }
  0xd2   : > { %v932_v58 = vrot.slane %v923_v52, %v2137_v62 }
  0xd3   : > { %v1735_v59 = vpack.c.bf16 %v522_v55, %v521_v54  ;;  %v591_v61 = vpop.permute.xlu1 %590  ;;  %v589_v63 = vpop.permute.xlu0 %588  ;;  %v928_v55 = vrot.slane %v923_v52, %v2134_v60 }
  0xd4   : > { %v593_v0 = vsel %vm592_vm7, %v589_v63, %v591_v61  ;;  %v594_v1 = vsel %vm592_vm7, %v591_v61, %v589_v63 }
  0xd5   : > { %531 = vst [vmem:[#allocation2 + $0x8] sm:$0x33] %v1735_v59  ;;  %v608_v2 = vmul.f32 %v601_v56, %v593_v0  ;;  %v609_v7 = vmul.f32 %v605_v57, %v594_v1 }
  0xd7   : > { %v1738_v13 = vpack.c.bf16 %v609_v7, %v608_v2  ;;  %v654_v15 = vpop.permute.xlu1 %653  ;;  %v652_v16 = vpop.permute.xlu0 %651  ;;  %v1069_v7 = vld [vmem:[#allocation3] sm:$0x1] }
  0xd8   : > { %v656_v17 = vsel %vm655_vm8, %v652_v16, %v654_v15  ;;  %v657_v18 = vsel %vm655_vm8, %v654_v15, %v652_v16  ;;  %v869_v16 = vld [vmem:[#allocation4 + $0x2] ss:$8 sm:$0x3] }
  0xd9   : > { %v617_v20 = vrot.slane %v1738_v13, 6  ;;  %v671_v21 = vmul.f32 %v664_v8, %v656_v17  ;;  %v672_v22 = vmul.f32 %v668_v9, %v657_v18  ;;  %v839_v8 = vld [vmem:[#allocation4 + $0x1] ss:$8 sm:$0x3]  ;;  %v878_v24 = vrot.slane %v869_v16, %v2137_v62 }
  0xda   : > { %v844_v13 = vrot.slane %v839_v8, %v2134_v60  ;;  %v848_v15 = vrot.slane %v839_v8, %v2137_v62  ;;  %v810_v8 = vld [vmem:[#allocation4] ss:$8 sm:$0x3] }
  0xdb   : > { %619 = vst [vmem:[#allocation2 + $0x10] sm:$0xcc] %v617_v20  ;;  %v1740_v10 = vpack.c.bf16 %v672_v22, %v671_v21  ;;  %v623_v25 = vpop.permute.xlu1 %622  ;;  %v621_v26 = vpop.permute.xlu0 %620 }
  0xdc   : > { %v625_v27 = vsel %vm624_vm9, %v621_v26, %v623_v25  ;;  %v626_v28 = vsel %vm624_vm9, %v623_v25, %v621_v26  ;;  %v1825_v29 = vld [vmem:[#allocation2 + $0x4] ss:$8 sps:$4 sm:$0xff]   ;;  %v1827_v31 = vld [vmem:[#allocation2] ss:$8 sps:$4 sm:$0xff]  }
  0xdd   : > { %v680_v32 = vrot.slane %v1740_v10, 6  ;;  %v640_v33 = vmul.f32 %v633_v19, %v625_v27  ;;  %v641_v34 = vmul.f32 %v637_v23, %v626_v28  ;;  %761 = vmatprep.subr.bf16.mxu0 %v1825_v29  ;;  %v874_v23 = vrot.slane %v869_v16, %v2134_v60  ;;  %v899_v10 = vld [vmem:[#allocation4 + $0x3] ss:$8 sm:$0x3] }
  0xde   : > { %762 = vmatpush1.bf16.msra.mxu0 %v1827_v31  ;;  %v815_v16 = vrot.slane %v810_v8, %v2134_v60 }
  0xdf   : > { %682 = vst [vmem:[#allocation2 + $0x18] sm:$0xcc] %v680_v32  ;;  %v1739_v36 = vpack.c.bf16 %v641_v34, %v640_v33  ;;  %v686_v37 = vpop.permute.xlu1 %685  ;;  %v684_v38 = vpop.permute.xlu0 %683  ;;  %v908_v34 = vrot.slane %v899_v10, %v2137_v62 }
  0xe0   : > { %v688_v39 = vsel %vm687_vm10, %v684_v38, %v686_v37  ;;  %v689_v40 = vsel %vm687_vm10, %v686_v37, %v684_v38 }
  0xe1   : > { %650 = vst [vmem:[#allocation2 + $0x18] sm:$0x33] %v1739_v36  ;;  %v703_v41 = vmul.f32 %v696_v30, %v688_v39  ;;  %v704_v42 = vmul.f32 %v700_v35, %v689_v40  ;;  %v904_v30 = vrot.slane %v899_v10, %v2134_v60  ;;  %v952_v35 = vld [vmem:[#allocation4 + $0x5] ss:$8 sm:$0x3] }
  0xe2   : > { %v957_v40 = vrot.slane %v952_v35, %v2134_v60 }
  0xe3   : > { %v1741_v43 = vpack.c.bf16 %v704_v42, %v703_v41 }
  0xe5   : > { %713 = vst [vmem:[#allocation2 + $0x20] sm:$0x33] %v1741_v43 }
  0xe8   : > { %v1828_v44 = vld [vmem:[#allocation2 + $0x14] ss:$8 sps:$4 sm:$0xff]   ;;  %v1830_v45 = vld [vmem:[#allocation2 + $0x10] ss:$8 sps:$4 sm:$0xff]  }
  0xe9   : > { %763 = vmatprep.subr.bf16.mxu0 %v1828_v44 }
  0xea   : > { %764 = vmatpush1.bf16.msra.mxu0 %v1830_v45  ;;  %v961_v45 = vrot.slane %v952_v35, %v2137_v62 }
  0xec   : > { %v718_v46 = vld [vmem:[#allocation2 + $0x20] sm:$0x33] }
  0xed   : > { %v1686_v47 = vcombine.high %v718_v46, %v718_v46  ;;  %v1685_v48 = vcombine.low %v718_v46, %v718_v46  ;;  %v982_v46 = vld [vmem:[#allocation4 + $0x6] ss:$8 sm:$0x3] }
  0xef   : > { %1687 = vmatprep.subr.msk.bf16.mxu0 %vm431_vm1, %v1686_v47  ;;  %v756_v49 = vsel %vm431_vm1, %v1685_v48, 0 }
  0xf0   : > { %766 = vmatpush1.bf16.msra.mxu0 %v756_v49  ;;  %v724_v51 = vpop.permute.xlu0 %723 }
  0xf3   : > { %1688 = vmatmul.mubr.msk.bf16.vlgmr.msra.gmra.mrb[0].mxu0 %vm751_vm11, %v719_v50 }
  0xf4   : > { %1136 = vmatprep.mubr.bf16.mxu0 %v1964_v12 }
 0x1c6   : > { %v795_v53 = vpop.f32.mrb[0].mxu0 }
 0x1c7   : > { %v796_v54 = vadd.f32 %v795_v53, %v724_v51  ;;  %v797_v56 = vpop.f32.mrb[1].mxu0 }
 0x1c8   : > { %v798_v57 = vadd.f32 %v797_v56, %v724_v51  ;;  %v799_v59 = vpop.f32.mrb[2].mxu0  ;;  %v987_v51 = vrot.slane %v982_v46, %v2134_v60  ;;  %v1012_v56 = vld [vmem:[#allocation4 + $0x7] ss:$8 sm:$0x3] }
 0x1c9   : > { %v802_v61 = vmax.f32 %v796_v54, 0.0  ;;  %v800_v63 = vpop.f32.mrb[3].mxu0 }
 0x1ca   : > { %v803_v0 = vmax.f32 %v798_v57, 0.0 }
 0x1cb   : > { %v935_v1 = vmul.f32 %v928_v55, %v802_v61  ;;  %863 = vrot.lane.b32.xlu0 %v802_v61, %s1959_s26  ;;  %833 = vrot.lane.b32.xlu1 %v802_v61, %s1957_s18  ;;  %v991_v55 = vrot.slane %v982_v46, %v2137_v62 }
 0x1cc   : > { %v936_v12 = vmul.f32 %v932_v58, %v803_v0 }
 0x1ce   : > { %v1746_v2 = vpack.c.bf16 %v936_v12, %v935_v1 }
 0x1cf   : > { %893 = vrot.lane.b32.xlu0 %v802_v61, %s1956_s17  ;;  %835 = vrot.lane.b32.xlu1 %v803_v0, %s1957_s18 }
 0x1d0   : > { %945 = vst [vmem:[#allocation2 + $0x8] sm:$0x11] %v1746_v2 }
 0x1d3   : > { %946 = vrot.lane.b32.xlu0 %v802_v61, %s1960_s27  ;;  %865 = vrot.lane.b32.xlu1 %v803_v0, %s1959_s26 }
 0x1d7   : > { %976 = vrot.lane.b32.xlu0 %v802_v61, %s1962_s29  ;;  %895 = vrot.lane.b32.xlu1 %v803_v0, %s1956_s17 }
 0x1db   : > { %1006 = vrot.lane.b32.xlu0 %v802_v61, %s1961_s28  ;;  %948 = vrot.lane.b32.xlu1 %v803_v0, %s1960_s27 }
 0x1df   : > { %804 = vrot.lane.b32.xlu0 %v802_v61, %s1958_s23  ;;  %978 = vrot.lane.b32.xlu1 %v803_v0, %s1962_s29 }
 0x1e3   : > { %1036 = vrot.lane.b32.xlu0 %v802_v61, %s1963_s30  ;;  %1008 = vrot.lane.b32.xlu1 %v803_v0, %s1961_s28 }
 0x1e7   : > { %1072 = vperm.xlu0 %1823, %v1069_v7   ;;  %806 = vrot.lane.b32.xlu1 %v803_v0, %s1958_s23  ;;  %v1021_v7 = vrot.slane %v1012_v56, %v2137_v62 }
 0x1eb   : > { %1038 = vrot.lane.b32.xlu1 %v803_v0, %s1963_s30  ;;  %v1017_v0 = vrot.slane %v1012_v56, %v2134_v60 }
 0x23d   : > { %v864_v9 = vpop.permute.xlu0 %863  ;;  %v834_v11 = vpop.permute.xlu1 %833 }
 0x241   : > { %v894_v17 = vpop.permute.xlu0 %893  ;;  %v836_v18 = vpop.permute.xlu1 %835 }
 0x242   : > { %v837_v19 = vsel %vm473_vm4, %v834_v11, %v836_v18  ;;  %v838_v20 = vsel %vm473_vm4, %v836_v18, %v834_v11 }
 0x243   : > { %v851_v21 = vmul.f32 %v844_v13, %v838_v20  ;;  %v852_v22 = vmul.f32 %v848_v15, %v837_v19 }
 0x245   : > { %v1743_v25 = vpack.c.bf16 %v852_v22, %v851_v21  ;;  %v947_v26 = vpop.permute.xlu0 %946  ;;  %v866_v27 = vpop.permute.xlu1 %865  ;;  %v819_v21 = vrot.slane %v810_v8, %v2137_v62  ;;  %v1042_v22 = vld [vmem:[#allocation4 + $0x10] ss:$8 sm:$0x3] }
 0x246   : > { %v867_v28 = vsel %vm505_vm6, %v864_v9, %v866_v27  ;;  %v868_v29 = vsel %vm505_vm6, %v866_v27, %v864_v9 }
 0x247   : > { %v860_v31 = vrot.slane %v1743_v25, 7  ;;  %v881_v32 = vmul.f32 %v874_v23, %v868_v29  ;;  %v882_v33 = vmul.f32 %v878_v24, %v867_v28 }
 0x249   : > { %862 = vst [vmem:[#allocation2] sm:$0x22] %v860_v31  ;;  %v1744_v36 = vpack.c.bf16 %v882_v33, %v881_v32  ;;  %v896_v37 = vpop.permute.xlu1 %895  ;;  %v977_v42 = vpop.permute.xlu0 %976 }
 0x24a   : > { %v897_v38 = vsel %vm536_vm3, %v894_v17, %v896_v37  ;;  %v898_v39 = vsel %vm536_vm3, %v896_v37, %v894_v17 }
 0x24b   : > { %v890_v41 = vrot.slane %v1744_v36, 6  ;;  %v911_v43 = vmul.f32 %v904_v30, %v898_v39  ;;  %v912_v44 = vmul.f32 %v908_v34, %v897_v38  ;;  %v1051_v30 = vrot.slane %v1042_v22, %v2137_v62 }
 0x24d   : > { %892 = vst [vmem:[#allocation2] sm:$0x44] %v890_v41  ;;  %v1745_v47 = vpack.c.bf16 %v912_v44, %v911_v43  ;;  %v949_v48 = vpop.permute.xlu1 %948  ;;  %v1007_v57 = vpop.permute.xlu0 %1006 }
 0x24e   : > { %v950_v49 = vsel %vm592_vm7, %v947_v26, %v949_v48  ;;  %v951_v50 = vsel %vm592_vm7, %v949_v48, %v947_v26  ;;  %v1047_v26 = vrot.slane %v1042_v22, %v2134_v60 }
 0x24f   : > { %v920_v52 = vrot.slane %v1745_v47, 5  ;;  %v964_v53 = vmul.f32 %v957_v40, %v950_v49  ;;  %v965_v54 = vmul.f32 %v961_v45, %v951_v50  ;;  %v1068_v45 = vld [vmem:[%s2451_s5] sm:$0x1] }
 0x251   : > { %922 = vst [vmem:[#allocation2] sm:$0x88] %v920_v52  ;;  %v1747_v58 = vpack.c.bf16 %v965_v54, %v964_v53  ;;  %v979_v59 = vpop.permute.xlu1 %978  ;;  %v805_v17 = vpop.permute.xlu0 %804 }
 0x252   : > { %v980_v61 = vsel %vm624_vm9, %v977_v42, %v979_v59  ;;  %v981_v63 = vsel %vm624_vm9, %v979_v59, %v977_v42 }
 0x253   : > { %v973_v1 = vrot.slane %v1747_v58, 7  ;;  %v994_v12 = vmul.f32 %v987_v51, %v980_v61  ;;  %v995_v2 = vmul.f32 %v991_v55, %v981_v63 }
 0x255   : > { %975 = vst [vmem:[#allocation2 + $0x8] sm:$0x22] %v973_v1  ;;  %v1748_v9 = vpack.c.bf16 %v995_v2, %v994_v12  ;;  %v1009_v11 = vpop.permute.xlu1 %1008  ;;  %v1037_v31 = vpop.permute.xlu0 %1036  ;;  %v1158_v12 = vsub.f32 %v2115_v5, %v2117_v6  ;;  %v1287_v2 = vld [vmem:[#allocation4 + $0x4] ss:$8 sm:$0x3] }
 0x256   : > { %v1010_v13 = vsel %vm655_vm8, %v1007_v57, %v1009_v11  ;;  %v1011_v15 = vsel %vm655_vm8, %v1009_v11, %v1007_v57 }
 0x257   : > { %v1003_v18 = vrot.slane %v1748_v9, 6  ;;  %v1024_v19 = vmul.f32 %v1017_v0, %v1010_v13  ;;  %v1025_v20 = vmul.f32 %v1021_v7, %v1011_v15  ;;  %v1157_v0 = vsub.f32 %v2111_v3, %v2113_v4 }
 0x258   : > { %v1292_v13 = vrot.slane %v1287_v2, %v2134_v60 }
 0x259   : > { %1005 = vst [vmem:[#allocation2 + $0x8] sm:$0x44] %v1003_v18  ;;  %v1749_v23 = vpack.c.bf16 %v1025_v20, %v1024_v19  ;;  %v807_v24 = vpop.permute.xlu1 %806  ;;  %v1177_v20 = vld [vmem:[#allocation4] ss:$8 sm:$0x3] }
 0x25a   : > { %v808_v10 = vsel %vm443_vm5, %v805_v17, %v807_v24  ;;  %v809_v25 = vsel %vm443_vm5, %v807_v24, %v805_v17  ;;  %v1186_v22 = vrot.slane %v1177_v20, %v2137_v62  ;;  %v1206_v24 = vld [vmem:[#allocation4 + $0x1] ss:$8 sm:$0x3] }
 0x25b   : > { %v1033_v27 = vrot.slane %v1749_v23, 5  ;;  %v822_v28 = vmul.f32 %v815_v16, %v809_v25  ;;  %v823_v29 = vmul.f32 %v819_v21, %v808_v10  ;;  %v1296_v16 = vrot.slane %v1287_v2, %v2137_v62 }
 0x25c   : > { %v1182_v21 = vrot.slane %v1177_v20, %v2134_v60 }
 0x25d   : > { %1035 = vst [vmem:[#allocation2 + $0x8] sm:$0x88] %v1033_v27  ;;  %v1742_v32 = vpack.c.bf16 %v823_v29, %v822_v28  ;;  %v1039_v33 = vpop.permute.xlu1 %1038  ;;  %v1211_v29 = vrot.slane %v1206_v24, %v2134_v60 }
 0x25e   : > { %v1040_v34 = vsel %vm687_vm10, %v1037_v31, %v1039_v33  ;;  %v1041_v35 = vsel %vm687_vm10, %v1039_v33, %v1037_v31 }
 0x25f   : > { %832 = vst [vmem:[#allocation2] sm:$0x11] %v1742_v32  ;;  %v1054_v36 = vmul.f32 %v1047_v26, %v1040_v34  ;;  %v1055_v37 = vmul.f32 %v1051_v30, %v1041_v35  ;;  %v1215_v30 = vrot.slane %v1206_v24, %v2137_v62  ;;  %v1235_v32 = vld [vmem:[#allocation4 + $0x2] ss:$8 sm:$0x3] }
 0x261   : > { %v1750_v38 = vpack.c.bf16 %v1055_v37, %v1054_v36 }
 0x263   : > { %1064 = vst [vmem:[#allocation2 + $0x10] sm:$0x11] %v1750_v38 }
 0x266   : > { %v1833_v39 = vld [vmem:[#allocation2 + $0x4] ss:$8 sps:$4 sm:$0xff]   ;;  %v1835_v40 = vld [vmem:[#allocation2] ss:$8 sps:$4 sm:$0xff]   ;;  %v1073_v46 = vpop.permute.xlu0 %1072 }
 0x267   : > { %1104 = vmatprep.subr.bf16.mxu0 %v1833_v39  ;;  %v1078_v47 = vrot.slane %v1073_v46, %v2134_v60  ;;  %v1240_v39 = vrot.slane %v1235_v32, %v2134_v60 }
 0x268   : > { %1105 = vmatpush1.bf16.msra.mxu0 %v1835_v40  ;;  %v1244_v40 = vrot.slane %v1235_v32, %v2137_v62 }
 0x26a   : > { %v1067_v41 = vld [vmem:[#allocation2 + $0x10] sm:$0x11] }
 0x26b   : > { %v1701_v42 = vcombine.high %v1067_v41, %v1067_v41  ;;  %v1700_v43 = vcombine.low %v1067_v41, %v1067_v41  ;;  %v1264_v41 = vld [vmem:[#allocation4 + $0x3] ss:$8 sm:$0x3] }
 0x26d   : > { %1702 = vmatprep.subr.msk.bf16.mxu0 %vm428_vm0, %v1701_v42  ;;  %v1099_v44 = vsel %vm428_vm0, %v1700_v43, 0 }
 0x26e   : > { %1107 = vmatpush1.bf16.msra.mxu0 %v1099_v44 }
 0x271   : > { %1703 = vmatmul.mubr.msk.bf16.vlgmr.msra.gmra.mrb[4].mxu0 %vm1094_vm12, %v1068_v45 }
 0x344   : > { %v1138_v48 = vpop.f32.mrb[4].mxu0 }
 0x345   : > { %v1139_v49 = vadd.f32 %v1138_v48, %v1078_v47  ;;  %v1140_v50 = vpop.f32.mrb[5].mxu0  ;;  %v1273_v48 = vrot.slane %v1264_v41, %v2137_v62 }
 0x346   : > { %v1141_v51 = vadd.f32 %v1140_v50, %v1078_v47  ;;  %v1142_v52 = vpop.f32.mrb[6].mxu0  ;;  %v1269_v47 = vrot.slane %v1264_v41, %v2134_v60 }
 0x347   : > { %v1145_v53 = vsub.f32 0.0, %v1139_v49  ;;  %v1143_v54 = vpop.f32.mrb[7].mxu0 }
 0x348   : > { %v1146_v55 = vsub.f32 0.0, %v1141_v51  ;;  %v1316_v54 = vld [vmem:[#allocation4 + $0x5] ss:$8 sm:$0x3] }
 0x349   : > { %v1147_v56 = vmul.f32 1.442695, %v1145_v53 }
 0x34a   : > { %v1149_v57 = vmul.f32 1.442695, %v1146_v55 }
 0x34b   : > { %1839 = vpow2.f32 %v1147_v56 }
 0x34c   : > { %1841 = vpow2.f32 %v1149_v57 }
 0x355   : > { %v1840_v58 = vpop.eup %1839 }
 0x356   : > { %v1842_v59 = vpop.eup %1841  ;;  %v1151_v61 = vadd.f32 1.0, %v1840_v58 }
 0x357   : > { %v1152_v63 = vadd.f32 1.0, %v1842_v59 }
 0x358   : > { %1843 = vrcp.f32 %v1151_v61 }
 0x359   : > { %1845 = vrcp.f32 %v1152_v63  ;;  %v1321_v63 = vrot.slane %v1316_v54, %v2134_v60 }
 0x362   : > { %v1844_v1 = vpop.eup %1843 }
 0x363   : > { %v1846_v7 = vpop.eup %1845  ;;  %v1162_v8 = vrot.slane %v1844_v1, %v2134_v60  ;;  %v1345_v1 = vld [vmem:[#allocation4 + $0x6] ss:$8 sm:$0x3] }
 0x364   : > { %v1166_v9 = vrot.slane %v1846_v7, %v2134_v60 }
 0x365   : > { %v1167_v11 = vmul.f32 %v1162_v8, %v1157_v0  ;;  %v1325_v0 = vrot.slane %v1316_v54, %v2137_v62 }
 0x366   : > { %v1168_v15 = vmul.f32 %v1166_v9, %v1158_v12 }
 0x367   : > { %v1169_v17 = vadd.f32 %v1167_v11, %v2113_v4  ;;  %v1438_v4 = vld [vmem:[%s2454_s8 + $0x8] sm:$0xff]  ;;  %v1350_v11 = vrot.slane %v1345_v1, %v2134_v60 }
 0x368   : > { %v1170_v3 = vadd.f32 %v1168_v15, %v2117_v6  ;;  %v1437_v6 = vld [vmem:[%s2454_s8] sm:$0xff] }
 0x369   : > { %1171 = vrot.lane.b32.xlu1 %v1169_v17, %s1958_s23  ;;  %v2315_v18 = vmul.f32 %v1292_v13, %v1169_v17  ;;  %v1354_v13 = vrot.slane %v1345_v1, %v2137_v62 }
 0x36a   : > { %1173 = vrot.lane.b32.xlu0 %v1170_v3, %s1958_s23  ;;  %v2318_v5 = vmul.f32 %v1296_v16, %v1170_v3 }
 0x36c   : > { %v1755_v19 = vpack.c.bf16 %v2318_v5, %v2315_v18 }
 0x36d   : > { %1200 = vrot.lane.b32.xlu1 %v1169_v17, %s1957_s18 }
 0x36e   : > { %1202 = vrot.lane.b32.xlu0 %v1170_v3, %s1957_s18  ;;  %1309 = vst [vmem:[#allocation2 + $0x20] sm:$0xff] %v1755_v19 }
 0x371   : > { %1229 = vrot.lane.b32.xlu1 %v1169_v17, %s1959_s26 }
 0x372   : > { %1231 = vrot.lane.b32.xlu0 %v1170_v3, %s1959_s26  ;;  %s2402_s26 = scalar_lea.hbm %s2455_s9, %s1760_s22 }
 0x375   : > { %1258 = vrot.lane.b32.xlu1 %v1169_v17, %s1956_s17 }
 0x376   : > { %1260 = vrot.lane.b32.xlu0 %v1170_v3, %s1956_s17 }
 0x379   : > { %1310 = vrot.lane.b32.xlu1 %v1169_v17, %s1960_s27 }
 0x37a   : > { %1312 = vrot.lane.b32.xlu0 %v1170_v3, %s1960_s27  ;;  %s1889_s27 = sshll.u32 %s1965_s10, 4  ;;  %s1890_s27 = int_to_ptr.vmem [resolvable:$false] %s1889_s27 }
 0x37d   : > { %1339 = vrot.lane.b32.xlu1 %v1169_v17, %s1962_s29 }
 0x37e   : > { %1341 = vrot.lane.b32.xlu0 %v1170_v3, %s1962_s29  ;;  %s355_s29 = sand.u32 1, %s1943_s12  }
 0x37f   : > { %s2404_s17 = scalar_lea.sflag [#allocation6], %s355_s29 }
 0x381   : > { %1368 = vrot.lane.b32.xlu1 %v1169_v17, %s1961_s28 }
 0x382   : > { %1370 = vrot.lane.b32.xlu0 %v1170_v3, %s1961_s28  ;;  %s1891_s28 = scalar_lea.vmem %s1890_s27, 1024 }
 0x385   : > { %1397 = vrot.lane.b32.xlu1 %v1169_v17, %s1963_s30  ;;  %v1374_v17 = vld [vmem:[#allocation4 + $0x7] ss:$8 sm:$0x3] }
 0x386   : > { %1399 = vrot.lane.b32.xlu0 %v1170_v3, %s1963_s30  ;;  %s1667_s30 = sshll.u32 %s355_s29, 5 }
 0x387   : > { %s357_s15 = scalar_lea.vmem [#allocation7], %s1667_s30 }
 0x388   : > { %s1575_s24 = sshll.u32 %s357_s15, 4  ;;  %s2397_s24 = int_to_ptr.vmem [resolvable:$true] %s1575_s24 }
 0x389   : > { %1441 = vperm.xlu1 %1824, %v1437_v6   ;;  %s1885_s6 = scalar_lea.vmem %s2397_s24, 512  ;;  %p1892_p2 = scmp.lt.s32.totalorder %s2397_s24, %s1890_s27 }
 0x38a   : > { %1446 = vperm.xlu0 %1823, %v1438_v4   ;;  %p1886_p6 = scmp.ne.s32.totalorder %s2397_s24, %s1885_s6  ;;  %p1893_p3 = scmp.lt.s32.totalorder %s1891_s28, %s1885_s6 }
 0x38c   : > { %p1887_p10 = pnand %p1886_p6, %p2466_p9  ;;  %p1894_p4 = por %p1893_p3, %p1892_p2 }
 0x38e   : > { %p1888_p12 = pneg %p1887_p10 }
 0x390   : > { %p1895_p7 = pnand %p1894_p4, %p1888_p12 }
 0x3db   : > { %v1172_v23 = vpop.permute.xlu1 %1171 }
 0x3dc   : > { %v1174_v10 = vpop.permute.xlu0 %1173 }
 0x3dd   : > { %v1175_v25 = vsel %vm443_vm5, %v1172_v23, %v1174_v10  ;;  %v1176_v26 = vsel %vm443_vm5, %v1174_v10, %v1172_v23  ;;  %v1383_v23 = vrot.slane %v1374_v17, %v2137_v62 }
 0x3de   : > { %v1189_v27 = vmul.f32 %v1182_v21, %v1176_v26  ;;  %v1190_v28 = vmul.f32 %v1186_v22, %v1175_v25  ;;  %v1379_v22 = vrot.slane %v1374_v17, %v2134_v60 }
 0x3df   : > { %v1201_v31 = vpop.permute.xlu1 %1200 }
 0x3e0   : > { %v1751_v33 = vpack.c.bf16 %v1190_v28, %v1189_v27  ;;  %v1203_v34 = vpop.permute.xlu0 %1202 }
 0x3e1   : > { %v1204_v35 = vsel %vm473_vm4, %v1201_v31, %v1203_v34  ;;  %v1205_v36 = vsel %vm473_vm4, %v1203_v34, %v1201_v31 }
 0x3e2   : > { %1199 = vst [vmem:[#allocation2] sm:$0xff] %v1751_v33  ;;  %v1218_v37 = vmul.f32 %v1211_v29, %v1205_v36  ;;  %v1219_v38 = vmul.f32 %v1215_v30, %v1204_v35 }
 0x3e3   : > { %v1230_v42 = vpop.permute.xlu1 %1229 }
 0x3e4   : > { %v1752_v43 = vpack.c.bf16 %v1219_v38, %v1218_v37  ;;  %v1232_v44 = vpop.permute.xlu0 %1231  ;;  %v1847_v51 = vpack.c.bf16 %v1219_v38, %v1190_v28  ;;  %v1848_v52 = vpack.c.bf16 %v1218_v37, %v1189_v27  ;;  %v1403_v28 = vld [vmem:[#allocation4 + $0x10] ss:$8 sm:$0x3] }
 0x3e5   : > { %v1233_v45 = vsel %vm505_vm6, %v1230_v42, %v1232_v44  ;;  %v1234_v46 = vsel %vm505_vm6, %v1232_v44, %v1230_v42  ;;  %v1408_v34 = vrot.slane %v1403_v28, %v2134_v60  ;;  %v1412_v35 = vrot.slane %v1403_v28, %v2137_v62 }
 0x3e6   : > { %1228 = vst [vmem:[#allocation2 + $0x8] sm:$0xff] %v1752_v43  ;;  %v1247_v49 = vmul.f32 %v1240_v39, %v1234_v46  ;;  %v1248_v50 = vmul.f32 %v1244_v40, %v1233_v45  ;;  %1510 = vmatprep.subr.bf16.mxu1 %v1847_v51  ;;  %v1838_v43 = vld [vmem:[%s2453_s7] sm:$0xff]  }
 0x3e7   : > { %v1259_v53 = vpop.permute.xlu1 %1258  ;;  %1511 = vmatpush1.bf16.msra.mxu1 %v1848_v52 }
 0x3e8   : > { %v1753_v55 = vpack.c.bf16 %v1248_v50, %v1247_v49  ;;  %v1261_v56 = vpop.permute.xlu0 %1260 }
 0x3e9   : > { %v1262_v57 = vsel %vm536_vm3, %v1259_v53, %v1261_v56  ;;  %v1263_v58 = vsel %vm536_vm3, %v1261_v56, %v1259_v53 }
 0x3ea   : > { %1257 = vst [vmem:[#allocation2 + $0x10] sm:$0xff] %v1753_v55  ;;  %v1276_v59 = vmul.f32 %v1269_v47, %v1263_v58  ;;  %v1277_v61 = vmul.f32 %v1273_v48, %v1262_v57 }
 0x3eb   : > { %v1311_v12 = vpop.permute.xlu1 %1310 }
 0x3ec   : > { %v1754_v2 = vpack.c.bf16 %v1277_v61, %v1276_v59  ;;  %v1313_v7 = vpop.permute.xlu0 %1312  ;;  %v1849_v3 = vpack.c.bf16 %v1277_v61, %v1248_v50  ;;  %v1850_v19 = vpack.c.bf16 %v1276_v59, %v1247_v49 }
 0x3ed   : > { %v1314_v8 = vsel %vm592_vm7, %v1311_v12, %v1313_v7  ;;  %v1315_v9 = vsel %vm592_vm7, %v1313_v7, %v1311_v12 }
 0x3ee   : > { %1286 = vst [vmem:[#allocation2 + $0x18] sm:$0xff] %v1754_v2  ;;  %v1328_v15 = vmul.f32 %v1321_v63, %v1314_v8  ;;  %v1329_v16 = vmul.f32 %v1325_v0, %v1315_v9  ;;  %1512 = vmatprep.subr.bf16.mxu1 %v1849_v3 }
 0x3ef   : > { %v1340_v4 = vpop.permute.xlu1 %1339  ;;  %1513 = vmatpush1.bf16.msra.mxu1 %v1850_v19 }
 0x3f0   : > { %v1342_v6 = vpop.permute.xlu0 %1341  ;;  %v1851_v25 = vpack.c.bf16 %v1329_v16, %v2318_v5  ;;  %v1852_v26 = vpack.c.bf16 %v1328_v15, %v2315_v18 }
 0x3f1   : > { %v1343_v20 = vsel %vm624_vm9, %v1340_v4, %v1342_v6  ;;  %v1344_v21 = vsel %vm624_vm9, %v1342_v6, %v1340_v4 }
 0x3f2   : > { %v1357_v24 = vmul.f32 %v1350_v11, %v1343_v20  ;;  %v1358_v10 = vmul.f32 %v1354_v13, %v1344_v21  ;;  %1514 = vmatprep.subr.bf16.mxu1 %v1851_v25 }
 0x3f3   : > { %v1369_v27 = vpop.permute.xlu1 %1368  ;;  %1515 = vmatpush1.bf16.msra.mxu1 %v1852_v26 }
 0x3f4   : > { %v1371_v29 = vpop.permute.xlu0 %1370 }
 0x3f5   : > { %v1372_v30 = vsel %vm655_vm8, %v1369_v27, %v1371_v29  ;;  %v1373_v31 = vsel %vm655_vm8, %v1371_v29, %v1369_v27 }
 0x3f6   : > { %v1386_v32 = vmul.f32 %v1379_v22, %v1372_v30  ;;  %v1387_v33 = vmul.f32 %v1383_v23, %v1373_v31 }
 0x3f7   : > { %v1398_v5 = vpop.permute.xlu1 %1397 }
 0x3f8   : > { %v1400_v36 = vpop.permute.xlu0 %1399  ;;  %v1853_v40 = vpack.c.bf16 %v1387_v33, %v1358_v10  ;;  %v1854_v41 = vpack.c.bf16 %v1386_v32, %v1357_v24 }
 0x3f9   : > { %v1401_v18 = vsel %vm687_vm10, %v1398_v5, %v1400_v36  ;;  %v1402_v37 = vsel %vm687_vm10, %v1400_v36, %v1398_v5 }
 0x3fa   : > { %v1415_v38 = vmul.f32 %v1408_v34, %v1401_v18  ;;  %v1416_v39 = vmul.f32 %v1412_v35, %v1402_v37  ;;  %1516 = vmatprep.subr.bf16.mxu1 %v1853_v40 }
 0x3fb   : > { %1517 = vmatpush1.bf16.msra.mxu1 %v1854_v41 }
 0x3fc   : > { %v1855_v42 = vpack.c.bf16 %v1416_v39, %v1416_v39  ;;  %v1856_v60 = vpack.c.bf16 %v1415_v38, %v1415_v38 }
 0x3fe   : > { %1724 = vmatprep.subr.msk.bf16.mxu1 %vm1503_vm13, %v1855_v42  ;;  %v1505_v62 = vsel %vm1503_vm13, %v1856_v60, 0 }
 0x3ff   : > { %1519 = vmatpush1.bf16.msra.mxu1 %v1505_v62 }
 0x402   : > { %1725 = vmatmul.mubr.msk.bf16.vlgmr.msra.gmra.mrb[0].mxu1 %vm1499_vm14, %v1838_v43 }
 0x408   : > { %v1442_v14 = vpop.permute.xlu1 %1441 }
 0x409   : > { %v1447_v47 = vpop.permute.xlu0 %1446 }
 0x4d5   : > { %v1544_v44 = vpop.f32.mrb[0].mxu1 }
 0x4d6   : > { %v1545_v45 = vadd.f32 %v1544_v44, %v1442_v14  ;;  %v1546_v46 = vpop.f32.mrb[1].mxu1 }
 0x4d7   : > { %v1547_v48 = vadd.f32 %v1546_v46, %v1442_v14  ;;  %v1548_v49 = vpop.f32.mrb[2].mxu1 }
 0x4d8   : > { %v1553_v50 = vmax.f32 %v1545_v45, 0.0  ;;  %v1549_v51 = vadd.f32 %v1548_v49, %v1447_v47  ;;  %v1550_v52 = vpop.f32.mrb[3].mxu1 }
 0x4d9   : > { %v1554_v53 = vmax.f32 %v1547_v48, 0.0  ;;  %v1551_v54 = vadd.f32 %v1550_v52, %v1447_v47 }
 0x4da   : > { %1557 = vst [vmem:[%s357_s15] sm:$0xff] %v1553_v50  ;;  %v1555_v55 = vmax.f32 %v1549_v51, 0.0 }
 0x4db   : > { %1558 = vst [vmem:[%s357_s15 + $0x8] sm:$0xff] %v1554_v53  ;;  %v1556_v56 = vmax.f32 %v1551_v54, 0.0 }
 0x4dc   : > { %1559 = vst [vmem:[%s357_s15 + $0x10] sm:$0xff] %v1555_v55 }
 0x4dd   : > { %1560 = vst [vmem:[%s357_s15 + $0x18] sm:$0xff] %v1556_v56 }
 0x4de   : > { %1898 = shalt.err (!%p1895_p7)
}
 0x4df   : > { %s1899_s29 = scalar_lea.hbm %s2402_s26, 512  ;;  %s1903_s22 = scalar_lea.hbm %s2455_s9, 1024 }
 0x4e0   : > { %p1900_p8 = scmp.ne.s32.totalorder %s2402_s26, %s1899_s29  ;;  %p1904_p1 = scmp.lt.u32.totalorder %s2402_s26, %s2455_s9 }
 0x4e1   : > { %p1905_p0 = scmp.lt.u32.totalorder %s1903_s22, %s1899_s29  ;;  %p1907_p6 = scmp.lt.u32.totalorder %s1899_s29, %s2402_s26 }
 0x4e2   : > { %p1901_p11 = pnand %p1900_p8, %p2466_p9 }
 0x4e3   : > { %p1906_p5 = por %p1905_p0, %p1904_p1 }
 0x4e4   : > { %p1902_p13 = pneg %p1901_p11 }
 0x4e5   : > { %p1908_p10 = por %p1907_p6, %p1906_p5 }
 0x4e7   : > { %p1909_p12 = pnand %p1908_p10, %p1902_p13 }
 0x4e9   : > { %1912 = shalt.err (!%p1909_p12)
}
 0x4ea   : > { %s1966_s6 = smov 256  }
 0x4eb   : > { %1765 = dma.vmem_to_hbm [thread:$0]  (%p2466_p9), %s2397_s24, 512, %s2402_s26, %s2404_s17, %s1966_s6, %s1966_s6, %s1957_s18  }
 0x4ec PF: > { %p1777_p2 = scmp.ge.s32.totalorder %s1951_s14, 2  ;;  %s1590_s10 = sand.u32 1, %s1939_s11  }
 0x4ed   : > { %p2467_p3 = scmp.ne.s32.totalorder %s2460_s21, 0  ;;  %s1591_s27 = scalar_lea.sflag [#allocation6], %s1590_s10 }
 0x4ef   : > { %p1772_p4 = pnand %p1777_p2, %p2467_p3 }
 0x4f1   : > { %1934 = dma.done.wait (!%p1772_p4), %s1591_s27, 512  }
 0x4f2   : > { %1936 = vsyncadd (!%p1772_p4), %s1591_s27, 4294966784  ;;  %p22_p7 = scmp.ge.s32.totalorder %s2045_s16, 4   ;;  %s2468_s11 = smov %s1943_s12 }
 0x4f3   : > { %s2469_s12 = smov %s1947_s13  ;;  %s2470_s13 = smov %s2056_s19 }
 0x4f4   : > { %s2471_s14 = smov %s2045_s16  ;;  %24 = sbr.rel (!%p22_p7) target bundleno = 7 (0x7), region = 107 }
 0x4fb   :  { %1596 = vsyncpa [#allocation5], 1 }
 0x4fc   :  { %1598 = vsyncpa [#allocation5 + $0x1], 1 }
 0x4fd   :  { %1599 = vsyncpa [#allocation6], 1 }
 0x4fe   :  { %1601 = vsyncpa [#allocation6 + $0x1], 1 }

</bundles_post_ra>
